<compile_context>
chip_gen: v7x
topology: tpu7x:2x2x1
jax: 0.10.0
libtpu: 0.0.40
codegen_flags: <defaults>
</compile_context>

<pallas_src>
import math
import functools

import jax
import jax.numpy as jnp
from jax.experimental import pallas as pl
from jax.experimental.pallas import tpu as pltpu


def _round_up(v, m):
    return (v + m - 1) // m * m


def _pad2d(w, rows, cols):
    r, c = w.shape
    if (r, c) == (rows, cols):
        return w
    return jnp.pad(w, ((0, rows - r), (0, cols - c)))


@functools.lru_cache(maxsize=None)
def _single_buffer_supported():
    """Probe once whether BlockSpec(pipeline_mode=pl.Buffered(1)) lowers/runs."""
    if not hasattr(pl, "Buffered"):
        return False

    def _copy(x_ref, o_ref):
        o_ref[...] = x_ref[...]

    try:
        spec = pl.BlockSpec((8, 128), lambda i: (0, 0),
                            pipeline_mode=pl.Buffered(1))
        out = pl.pallas_call(
            _copy,
            out_shape=jax.ShapeDtypeStruct((8, 128), jnp.float32),
            grid=(1,),
            in_specs=[spec],
            out_specs=pl.BlockSpec((8, 128), lambda i: (0, 0)),
        )(jnp.zeros((8, 128), jnp.float32))
        jax.block_until_ready(out)
        return True
    except Exception:  # any failure -> safe fallback to default double-buffering
        return False


def _const_weight_spec(shape):
    """BlockSpec for a grid-invariant operand (index_map always zeros)."""
    nd = len(shape)
    index_map = lambda *_: (0,) * nd
    if _single_buffer_supported():
        # Never re-fetched -> single buffer saves VMEM (critical on v7x).
        return pl.BlockSpec(shape, index_map, pipeline_mode=pl.Buffered(1))
    return pl.BlockSpec(shape, index_map)


# --------------------------- causal kernel ---------------------------------
def _rr_causal_kernel(x_ref, wqkv_ref, tri_ref, wo_ref, o_ref, prefix_ref):
    # x_ref:      (1, tq, Dp)  bf16 input tile
    # wqkv_ref:   (Dp, 3*Dp)   bf16 fused [Wq^T | Wk^T | Wv^T]
    # tri_ref:    (sub, sub)   bf16 lower-triangular ones (precomputed)
    # wo_ref:     (Dp, Dp)     bf16 Wo^T pre-scaled by sqrt(D)/T
    # prefix_ref: (1, Dp)      f32 running prefix sum of k*v over earlier rows
    @pl.when(pl.program_id(1) == 0)
    def _init():
        prefix_ref[...] = jnp.zeros_like(prefix_ref)

    x = x_ref[0]                                    # (tq, Dp) bf16
    tq, d = x.shape
    sub = tri_ref.shape[0]
    n_sub = tq // sub

    # Fused QKV projection on the MXU (bf16 operands, f32 accumulation).
    qkv = jnp.dot(x, wqkv_ref[...], preferred_element_type=jnp.float32)
    q = qkv[:, :d]                                  # (tq, Dp) f32
    # k*v stays in f32 on the VPU; cast once so the cumsum matmul is bf16-rate.
    kvt = (qkv[:, d:2 * d] * qkv[:, 2 * d:]).astype(jnp.bfloat16)

    tri = tri_ref[...]                              # (sub, sub) bf16 (exact 0/1)
    prefix = prefix_ref[...]                        # (1, Dp) f32 carried prefix

    # Sub-blocked causal cumsum: small (sub,sub)@(sub,Dp) MXU matmuls with an
    # f32 prefix carried across sub-blocks (and across grid steps).
    vhats = []
    for s in range(n_sub):                          # n_sub is small & static
        lo = s * sub
        cum = jnp.dot(tri, kvt[lo:lo + sub, :],
                      preferred_element_type=jnp.float32) + prefix
        prefix = cum[sub - 1:sub, :]
        vhats.append((q[lo:lo + sub, :] * cum).astype(wo_ref.dtype))
    prefix_ref[...] = prefix                        # carry to next tile

    vhat = vhats[0] if n_sub == 1 else jnp.concatenate(vhats, axis=0)
    # sqrt(D)/T is already folded into wo_ref by the wrapper.
    o_ref[0] = jnp.dot(vhat, wo_ref[...],
                       preferred_element_type=jnp.float32).astype(o_ref.dtype)


# ------------------------- non-causal kernels -------------------------------
def _rr_kv_sum_kernel(x_ref, wkv_ref, s_ref):
    # Accumulate sum_t (k_t * v_t) per batch into a resident (1, 1, Dp) output.
    @pl.when(pl.program_id(1) == 0)
    def _init():
        s_ref[...] = jnp.zeros_like(s_ref)

    x = x_ref[0]                                    # (tq, Dp) bf16
    d = x.shape[1]
    kv = jnp.dot(x, wkv_ref[...], preferred_element_type=jnp.float32)
    kvt = kv[:, :d] * kv[:, d:]                     # (tq, Dp) f32
    s_ref[...] += jnp.sum(kvt, axis=0, keepdims=True).reshape(1, 1, d)


def _rr_apply_kernel(x_ref, s_ref, wq_ref, wo_ref, o_ref):
    # out_tile = (q_tile * s) @ (Wo^T / D)   (1/D already folded into wo_ref)
    x = x_ref[0]                                    # (tq, Dp) bf16
    q = jnp.dot(x, wq_ref[...], preferred_element_type=jnp.float32)
    vhat = (q * s_ref[0]).astype(wo_ref.dtype)      # s_ref[0]: (1, Dp) f32
    o_ref[0] = jnp.dot(vhat, wo_ref[...],
                       preferred_element_type=jnp.float32).astype(o_ref.dtype)


# ------------------------------- wrapper ------------------------------------
def rr_self_attention(x, wq, wk, wv, wo, *, causal=True, block_q=512,
                      sub_block=None, out_dtype=None):
    """RRSelfAttention.forward.

    x: (B, T, D); wq/wk/wv/wo: (D, D) in PyTorch nn.Linear (out, in) layout.
    block_q:   sequence DMA tile. 512-1024 is good on v6e/v7x for D<=512;
               128-256 on v5e.  Automatically capped for large D (VMEM).
    sub_block: rows per triangular cumsum matmul (None -> 256/128 auto).
    out_dtype: output dtype (None -> x.dtype). Pass bf16 to halve HBM stores.
    """
    B, T, D = x.shape
    out_dtype = jnp.dtype(out_dtype) if out_dtype is not None else x.dtype

    Dp = _round_up(D, 128)                          # lane-dense weights/output

    # Cap the tile so the f32 QKV temporary (tq * 3*Dp * 4B) stays modest.
    vmem_cap = max(128, ((8 * 1024 * 1024) // (12 * Dp)) // 128 * 128)
    block_q = max(8, min(block_q, vmem_cap))
    tq = max(8, min(block_q, _round_up(T, 8)))
    if sub_block is not None and tq % sub_block == 0:
        sub = sub_block
    elif tq % 256 == 0:
        sub = 256
    elif tq % 128 == 0:
        sub = 128
    else:
        sub = tq
    Tp = _round_up(T, tq)
    nt = Tp // tq

    # ---- one-time weight prep (in real use, hoist out of the hot path) ----
    wq_t = _pad2d(wq.T, Dp, Dp)
    wk_t = _pad2d(wk.T, Dp, Dp)
    wv_t = _pad2d(wv.T, Dp, Dp)
    # Fold the scalar normalization into Wo^T (commutes through q*kvt and @Wo).
    scale = (math.sqrt(D) / T) if causal else (1.0 / D)
    wo_t = _pad2d(wo.T * scale, Dp, Dp).astype(jnp.bfloat16)

    # Pad + cast the activations only when needed; zero padding is exact for
    # bias-free linears and for the cumsum/sum (padded rows/cols contribute 0).
    needs_pad = (Tp != T) or (Dp != D)
    xp = jnp.pad(x, ((0, 0), (0, Tp - T), (0, Dp - D))) if needs_pad else x
    xp = xp.astype(jnp.bfloat16)

    x_spec = pl.BlockSpec((1, tq, Dp), lambda b, j: (b, j, 0))
    out_spec = pl.BlockSpec((1, tq, Dp), lambda b, j: (b, j, 0))
    vmem_bytes = 48 * 1024 * 1024                   # fits v5e/v6e/v7x

    if causal:
        wqkv = jnp.concatenate([wq_t, wk_t, wv_t], axis=1).astype(jnp.bfloat16)
        tri = jnp.tril(jnp.ones((sub, sub), dtype=jnp.bfloat16))
        out = pl.pallas_call(
            _rr_causal_kernel,
            out_shape=jax.ShapeDtypeStruct((B, Tp, Dp), out_dtype),
            grid_spec=pltpu.PrefetchScalarGridSpec(
                num_scalar_prefetch=0,
                grid=(B, nt),
                in_specs=[
                    x_spec,
                    _const_weight_spec((Dp, 3 * Dp)),
                    _const_weight_spec((sub, sub)),
                    _const_weight_spec((Dp, Dp)),
                ],
                out_specs=out_spec,
                scratch_shapes=[pltpu.VMEM((1, Dp), jnp.float32)]),
            compiler_params=pltpu.CompilerParams(
                # sequence axis carries the prefix -> must stay "arbitrary"
                dimension_semantics=("parallel", "arbitrary"),
                vmem_limit_bytes=vmem_bytes),
        )(xp, wqkv, tri, wo_t)
    else:
        wkv = jnp.concatenate([wk_t, wv_t], axis=1).astype(jnp.bfloat16)
        wq_b = wq_t.astype(jnp.bfloat16)
        s_spec = pl.BlockSpec((1, 1, Dp), lambda b, j: (b, 0, 0))

        # pass 1: s[b] = sum_t k_t * v_t  (resident f32 output accumulator)
        s = pl.pallas_call(
            _rr_kv_sum_kernel,
            out_shape=jax.ShapeDtypeStruct((B, 1, Dp), jnp.float32),
            grid_spec=pltpu.PrefetchScalarGridSpec(
                num_scalar_prefetch=0,
                grid=(B, nt),
                in_specs=[x_spec, _const_weight_spec((Dp, 2 * Dp))],
                out_specs=s_spec),
            compiler_params=pltpu.CompilerParams(
                dimension_semantics=("parallel", "arbitrary"),
                vmem_limit_bytes=vmem_bytes),
        )(xp, wkv)

        # pass 2: out = (q * s) @ (Wo^T / D); no carried state -> fully parallel
        # TODO(synk): optional algebraic fusion (fold s into the weights per
        # batch) would halve this pass's MXU FLOPs when T > D.
        out = pl.pallas_call(
            _rr_apply_kernel,
            out_shape=jax.ShapeDtypeStruct((B, Tp, Dp), out_dtype),
            grid_spec=pltpu.PrefetchScalarGridSpec(
                num_scalar_prefetch=0,
                grid=(B, nt),
                in_specs=[
                    x_spec,
                    s_spec,
                    _const_weight_spec((Dp, Dp)),
                    _const_weight_spec((Dp, Dp)),
                ],
                out_specs=out_spec),
            compiler_params=pltpu.CompilerParams(
                dimension_semantics=("parallel", "parallel"),
                vmem_limit_bytes=vmem_bytes),
        )(xp, s, wq_b, wo_t)

    if needs_pad:
        out = out[:, :T, :D]
    return out


# ------------------------------ reference -----------------------------------
def _reference(x, wq, wk, wv, wo, causal=True):
    q = x @ wq.T
    k = x @ wk.T
    v = x @ wv.T
    kvt = k * v
    if causal:
        denom = math.sqrt(x.shape[-1]) / x.shape[-2]
        kvt = jnp.cumsum(kvt, axis=-2) * denom
    else:
        kvt = jnp.sum(kvt, axis=-2, keepdims=True) / x.shape[-1]
    values_hat = q * kvt
    return values_hat @ wo.T


if __name__ == "__main__":
    key = jax.random.PRNGKey(0)
    kx, kq, kk, kv_, ko = jax.random.split(key, 5)

    def make_case(B, T, D):
        bound = 1.0 / math.sqrt(D)
        x = jax.random.normal(kx, (B, T, D), dtype=jnp.float32)
        wq = jax.random.uniform(kq, (D, D), jnp.float32, -bound, bound)
        wk = jax.random.uniform(kk, (D, D), jnp.float32, -bound, bound)
        wv = jax.random.uniform(kv_, (D, D), jnp.float32, -bound, bound)
        wo = jax.random.uniform(ko, (D, D), jnp.float32, -bound, bound)
        return x, wq, wk, wv, wo

    def check(out, ref, tag):
        err = float(jnp.max(jnp.abs(out - ref)))
        scale = float(jnp.max(jnp.abs(ref)))
        # kernel runs the MXU in bf16 (f32 accumulation); allow ~5% of range
        assert err <= 5e-2 * scale + 1e-4, f"{tag}: err={err} scale={scale}"

    # Multi-tile causal: T=512 with tq=256, sub=128 exercises both the
    # cross-tile f32 prefix carry and the intra-tile sub-blocked cumsum.
    x, wq, wk, wv, wo = make_case(2, 512, 128)
    ref_c = _reference(x, wq, wk, wv, wo, causal=True)
    out_c = jax.block_until_ready(
        rr_self_attention(x, wq, wk, wv, wo, causal=True,
                          block_q=256, sub_block=128))
    assert out_c.shape == x.shape
    check(out_c, ref_c, "causal tiled")

    # Default tiling (single 512-row tile, sub=256).
    out_cd = jax.block_until_ready(
        rr_self_attention(x, wq, wk, wv, wo, causal=True))
    check(out_cd, ref_c, "causal default")

    out_n = jax.block_until_ready(
        rr_self_attention(x, wq, wk, wv, wo, causal=False, block_q=256))
    check(out_n, _reference(x, wq, wk, wv, wo, causal=False), "non-causal")

    # Unaligned: D=96 -> padded to 128, T=40 -> one 40-row tile (sub=40),
    # exercising the pad/slice path.
    x2, wq2, wk2, wv2, wo2 = make_case(2, 40, 96)
    out_c2 = jax.block_until_ready(
        rr_self_attention(x2, wq2, wk2, wv2, wo2, causal=True))
    assert out_c2.shape == x2.shape
    check(out_c2, _reference(x2, wq2, wk2, wv2, wo2, causal=True),
          "causal padded")
    out_n2 = jax.block_until_ready(
        rr_self_attention(x2, wq2, wk2, wv2, wo2, causal=False))
    check(out_n2, _reference(x2, wq2, wk2, wv2, wo2, causal=False),
          "non-causal padded")

    print("KERNEL_OK")
</pallas_src>

<mosaic_0001>
module attributes {stable_mosaic.version = 11 : i64} {
  func.func @_copy(%arg0: i32, %arg1: memref<8x128xf32, #tpu.memory_space<vmem>>, %arg2: memref<8x128xf32, #tpu.memory_space<vmem>>) attributes {dimension_semantics = [#tpu.dimension_semantics<arbitrary>], iteration_bounds = array<i64: 1>, scalar_prefetch = 0 : i64, scratch_operands = 0 : i64, tpu.core_type = #tpu.core_type<tc>, window_params = [{pipeline_mode = #tpu.pipeline_mode<synchronous>, transform_indices = @transform_0, window_bounds = array<i64: 8, 128>}, {pipeline_mode = #tpu.pipeline_mode<synchronous>, transform_indices = @transform_1, window_bounds = array<i64: 8, 128>}]} {
    %c0 = arith.constant 0 : index
    %c0_0 = arith.constant 0 : index
    %0 = vector.load %arg1[%c0, %c0_0] : memref<8x128xf32, #tpu.memory_space<vmem>>, vector<8x128xf32>
    %c0_1 = arith.constant 0 : index
    %c0_2 = arith.constant 0 : index
    %1 = vector.load %arg2[%c0_1, %c0_2] : memref<8x128xf32, #tpu.memory_space<vmem>>, vector<8x128xf32>
    tpu.vector_store %arg2[%c0_1, %c0_2], %0 {strides = array<i32>} : memref<8x128xf32, #tpu.memory_space<vmem>>, vector<8x128xf32>,
    return
  }
  func.func @transform_0(%arg0: i32) -> (i32, i32) {
    %c0_i32 = arith.constant 0 : i32
    %c0_i32_0 = arith.constant 0 : i32
    %c0_i32_1 = arith.constant 0 : i32
    return %c0_i32, %c0_i32_0 : i32, i32
  }
  func.func @transform_1(%arg0: i32) -> (i32, i32) {
    %c0_i32 = arith.constant 0 : i32
    %c0_i32_0 = arith.constant 0 : i32
    %c0_i32_1 = arith.constant 0 : i32
    return %c0_i32, %c0_i32_0 : i32, i32
  }
}

module attributes {stable_mosaic.version = 11 : i64} {
  func.func @_rr_causal_kernel(%arg0: i32, %arg1: i32, %arg2: memref<1x256x128xbf16, #tpu.memory_space<vmem>>, %arg3: memref<128x384xbf16, #tpu.memory_space<vmem>>, %arg4: memref<128x128xbf16, #tpu.memory_space<vmem>>, %arg5: memref<128x128xbf16, #tpu.memory_space<vmem>>, %arg6: memref<1x256x128xf32, #tpu.memory_space<vmem>>, %arg7: memref<1x128xf32, #tpu.memory_space<vmem>>) attributes {dimension_semantics = [#tpu.dimension_semantics<parallel>, #tpu.dimension_semantics<arbitrary>], iteration_bounds = array<i64: 2, 2>, scalar_prefetch = 0 : i64, scratch_operands = 1 : i64, tpu.core_type = #tpu.core_type<tc>, window_params = [{transform_indices = @transform_0, window_bounds = array<i64: 1, 256, 128>}, {pipeline_mode = #tpu.pipeline_mode<synchronous>, transform_indices = @transform_1, window_bounds = array<i64: 128, 384>}, {pipeline_mode = #tpu.pipeline_mode<synchronous>, transform_indices = @transform_2, window_bounds = array<i64: 128, 128>}, {pipeline_mode = #tpu.pipeline_mode<synchronous>, transform_indices = @transform_3, window_bounds = array<i64: 128, 128>}, {transform_indices = @transform_4, window_bounds = array<i64: 1, 256, 128>}]} {
    %c0_i32 = arith.constant 0 : i32
    %0 = arith.cmpi eq, %arg1, %c0_i32 : i32
    %1 = arith.extui %0 : i1 to i32
    %c0_i32_0 = arith.constant 0 : i32
    %2 = arith.cmpi ne, %1, %c0_i32_0 : i32
    scf.if %2 {
      %cst_19 = arith.constant 0.000000e+00 : f32
      %37 = vector.broadcast %cst_19 : f32 to vector<1x128xf32>
      %c0_20 = arith.constant 0 : index
      %c0_21 = arith.constant 0 : index
      %38 = vector.load %arg7[%c0_20, %c0_21] : memref<1x128xf32, #tpu.memory_space<vmem>>, vector<1x128xf32>
      tpu.vector_store %arg7[%c0_20, %c0_21], %37 {strides = array<i32>} : memref<1x128xf32, #tpu.memory_space<vmem>>, vector<1x128xf32>,
    } else {
    }
    %c0 = arith.constant 0 : index
    %c0_1 = arith.constant 0 : index
    %c0_2 = arith.constant 0 : index
    %3 = vector.load %arg2[%c0, %c0_1, %c0_2] : memref<1x256x128xbf16, #tpu.memory_space<vmem>>, vector<1x256x128xbf16>
    %4 = vector.shape_cast %3 : vector<1x256x128xbf16> to vector<256x128xbf16>
    %c0_3 = arith.constant 0 : index
    %c0_4 = arith.constant 0 : index
    %5 = vector.load %arg3[%c0_3, %c0_4] : memref<128x384xbf16, #tpu.memory_space<vmem>>, vector<128x384xbf16>
    %cst = arith.constant dense<0.000000e+00> : vector<256x384xf32>
    %6 = tpu.matmul %4, %5, %cst {dimension_numbers = #tpu.dot_dimension_numbers<[1], [0], [0], [1], [0, 0, 1, 1], [], []>} : vector<256x128xbf16>, vector<128x384xbf16>, vector<256x384xf32> -> vector<256x384xf32>
    %7 = vector.extract_strided_slice %6 {offsets = [0, 0], sizes = [256, 128], strides = [1, 1]} : vector<256x384xf32> to vector<256x128xf32>
    %8 = vector.extract_strided_slice %6 {offsets = [0, 128], sizes = [256, 128], strides = [1, 1]} : vector<256x384xf32> to vector<256x128xf32>
    %9 = vector.extract_strided_slice %6 {offsets = [0, 256], sizes = [256, 128], strides = [1, 1]} : vector<256x384xf32> to vector<256x128xf32>
    %10 = arith.mulf %8, %9 : vector<256x128xf32>
    %11 = arith.truncf %10 : vector<256x128xf32> to vector<256x128xbf16>
    %c0_5 = arith.constant 0 : index
    %c0_6 = arith.constant 0 : index
    %12 = vector.load %arg4[%c0_5, %c0_6] : memref<128x128xbf16, #tpu.memory_space<vmem>>, vector<128x128xbf16>
    %c0_7 = arith.constant 0 : index
    %c0_8 = arith.constant 0 : index
    %13 = vector.load %arg7[%c0_7, %c0_8] : memref<1x128xf32, #tpu.memory_space<vmem>>, vector<1x128xf32>
    %14 = vector.extract_strided_slice %11 {offsets = [0, 0], sizes = [128, 128], strides = [1, 1]} : vector<256x128xbf16> to vector<128x128xbf16>
    %cst_9 = arith.constant dense<0.000000e+00> : vector<128x128xf32>
    %15 = tpu.matmul %12, %14, %cst_9 {dimension_numbers = #tpu.dot_dimension_numbers<[1], [0], [0], [1], [0, 0, 1, 1], [], []>} : vector<128x128xbf16>, vector<128x128xbf16>, vector<128x128xf32> -> vector<128x128xf32>
    %16 = vector.broadcast %13 : vector<1x128xf32> to vector<128x128xf32>
    %17 = arith.addf %15, %16 : vector<128x128xf32>
    %18 = vector.extract_strided_slice %17 {offsets = [127, 0], sizes = [1, 128], strides = [1, 1]} : vector<128x128xf32> to vector<1x128xf32>
    %19 = vector.extract_strided_slice %7 {offsets = [0, 0], sizes = [128, 128], strides = [1, 1]} : vector<256x128xf32> to vector<128x128xf32>
    %20 = arith.mulf %19, %17 : vector<128x128xf32>
    %21 = arith.truncf %20 : vector<128x128xf32> to vector<128x128xbf16>
    %22 = vector.extract_strided_slice %11 {offsets = [128, 0], sizes = [128, 128], strides = [1, 1]} : vector<256x128xbf16> to vector<128x128xbf16>
    %cst_10 = arith.constant dense<0.000000e+00> : vector<128x128xf32>
    %23 = tpu.matmul %12, %22, %cst_10 {dimension_numbers = #tpu.dot_dimension_numbers<[1], [0], [0], [1], [0, 0, 1, 1], [], []>} : vector<128x128xbf16>, vector<128x128xbf16>, vector<128x128xf32> -> vector<128x128xf32>
    %24 = vector.broadcast %18 : vector<1x128xf32> to vector<128x128xf32>
    %25 = arith.addf %23, %24 : vector<128x128xf32>
    %26 = vector.extract_strided_slice %25 {offsets = [127, 0], sizes = [1, 128], strides = [1, 1]} : vector<128x128xf32> to vector<1x128xf32>
    %27 = vector.extract_strided_slice %7 {offsets = [128, 0], sizes = [128, 128], strides = [1, 1]} : vector<256x128xf32> to vector<128x128xf32>
    %28 = arith.mulf %27, %25 : vector<128x128xf32>
    %29 = arith.truncf %28 : vector<128x128xf32> to vector<128x128xbf16>
    %c0_11 = arith.constant 0 : index
    %c0_12 = arith.constant 0 : index
    %30 = vector.load %arg7[%c0_11, %c0_12] : memref<1x128xf32, #tpu.memory_space<vmem>>, vector<1x128xf32>
    tpu.vector_store %arg7[%c0_11, %c0_12], %26 {strides = array<i32>} : memref<1x128xf32, #tpu.memory_space<vmem>>, vector<1x128xf32>,
    %31 = tpu.concatenate %21, %29 in 0 : vector<128x128xbf16>, vector<128x128xbf16> -> vector<256x128xbf16>
    %c0_13 = arith.constant 0 : index
    %c0_14 = arith.constant 0 : index
    %32 = vector.load %arg5[%c0_13, %c0_14] : memref<128x128xbf16, #tpu.memory_space<vmem>>, vector<128x128xbf16>
    %cst_15 = arith.constant dense<0.000000e+00> : vector<256x128xf32>
    %33 = tpu.matmul %31, %32, %cst_15 {dimension_numbers = #tpu.dot_dimension_numbers<[1], [0], [0], [1], [0, 0, 1, 1], [], []>} : vector<256x128xbf16>, vector<128x128xbf16>, vector<256x128xf32> -> vector<256x128xf32>
    %c0_16 = arith.constant 0 : index
    %c0_17 = arith.constant 0 : index
    %c0_18 = arith.constant 0 : index
    %34 = vector.load %arg6[%c0_16, %c0_17, %c0_18] : memref<1x256x128xf32, #tpu.memory_space<vmem>>, vector<1x256x128xf32>
    %35 = vector.shape_cast %34 : vector<1x256x128xf32> to vector<256x128xf32>
    %36 = vector.shape_cast %33 : vector<256x128xf32> to vector<1x256x128xf32>
    tpu.vector_store %arg6[%c0_16, %c0_17, %c0_18], %36 {strides = array<i32>} : memref<1x256x128xf32, #tpu.memory_space<vmem>>, vector<1x256x128xf32>,
    return
  }
  func.func @transform_0(%arg0: i32, %arg1: i32) -> (i32, i32, i32) {
    %c0_i32 = arith.constant 0 : i32
    %c0_i32_0 = arith.constant 0 : i32
    return %arg0, %arg1, %c0_i32 : i32, i32, i32
  }
  func.func @transform_1(%arg0: i32, %arg1: i32) -> (i32, i32) {
    %c0_i32 = arith.constant 0 : i32
    %c0_i32_0 = arith.constant 0 : i32
    %c0_i32_1 = arith.constant 0 : i32
    return %c0_i32, %c0_i32_0 : i32, i32
  }
  func.func @transform_2(%arg0: i32, %arg1: i32) -> (i32, i32) {
    %c0_i32 = arith.constant 0 : i32
    %c0_i32_0 = arith.constant 0 : i32
    %c0_i32_1 = arith.constant 0 : i32
    return %c0_i32, %c0_i32_0 : i32, i32
  }
  func.func @transform_3(%arg0: i32, %arg1: i32) -> (i32, i32) {
    %c0_i32 = arith.constant 0 : i32
    %c0_i32_0 = arith.constant 0 : i32
    %c0_i32_1 = arith.constant 0 : i32
    return %c0_i32, %c0_i32_0 : i32, i32
  }
  func.func @transform_4(%arg0: i32, %arg1: i32) -> (i32, i32, i32) {
    %c0_i32 = arith.constant 0 : i32
    %c0_i32_0 = arith.constant 0 : i32
    return %arg0, %arg1, %c0_i32 : i32, i32, i32
  }
}

</mosaic_0001>

<bundles_post_ra>
// kernel: tpu_custom_call.1
= control target key start
LH: loop header
LB: loop body
LE: loop exit
PB: predicated region body
PF: predicated region fallthrough
CT: control target
= control target key end

     0   :  { %6 = vsyncpa [#allocation3], 0  ;;  %s124_s0 = inlined_call_operand.hbm [shape: f32[8,128], index: 0, kind: input, shape index: {}]   ;;  %s125_s1 = inlined_call_operand.hbm [shape: f32[8,128], index: 1, kind: output, shape index: {}]  }
   0x1   :  { %7 = vsyncpa [#allocation4], 0  ;;  %s88_s6 = smov [#allocation2]   ;;  %s40_s10 = scalar_lea.hbm %s124_s0, 128 }
   0x2   :  { %s14_s7 = sshll.u32 %s88_s6, 4  ;;  %p41_p0 = scmp.ne.s32.totalorder %s124_s0, %s40_s10  ;;  %s15_s7 = int_to_ptr.vmem [resolvable:$true] %s14_s7 }
   0x3   :  { %p44_p1 = scmp.lt.u32.totalorder %s40_s10, %s124_s0 }
   0x5   :  { %p46_p2 = pnand %p44_p1, %p41_p0 }
   0x7   :  { %49 = shalt.err (!%p46_p2)
}
   0x8   :  { %s50_s15 = scalar_lea.vmem %s15_s7, 128  ;;  %p55_p4 = scmp.lt.s32.totalorder %s15_s7, %s15_s7 }
   0x9   :  { %p51_p3 = scmp.ne.s32.totalorder %s15_s7, %s50_s15  ;;  %p56_p5 = scmp.lt.s32.totalorder %s50_s15, %s50_s15 }
   0xb   :  { %p57_p6 = por %p56_p5, %p55_p4 }
   0xd   :  { %p58_p7 = pnand %p57_p6, %p51_p3 }
   0xf   :  { %61 = shalt.err (!%p58_p7)
}
  0x10   :  { %17 = dma.hbm_to_vmem [thread:$0]  %s124_s0, 128, %s15_s7, [#allocation3]  }
  0x11   :  { %84 = dma.done.wait [#allocation3], 128  }
  0x12   :  { %85 = vsyncadd [#allocation3], 4294967168  ;;  %s89_s18 = smov [#allocation5]   ;;  %v21_v0 = vld [vmem:[#allocation2] sm:$0xff] }
  0x13   :  { %s29_s19 = sshll.u32 %s89_s18, 4  ;;  %22 = vst [vmem:[#allocation5] sm:$0xff] %v21_v0  ;;  %s30_s19 = int_to_ptr.vmem [resolvable:$true] %s29_s19 }
  0x14   :  { %s62_s20 = scalar_lea.vmem %s30_s19, 128  ;;  %p67_p9 = scmp.lt.s32.totalorder %s30_s19, %s30_s19 }
  0x15   :  { %p63_p8 = scmp.ne.s32.totalorder %s30_s19, %s62_s20  ;;  %p68_p10 = scmp.lt.s32.totalorder %s62_s20, %s62_s20 }
  0x17   :  { %p69_p11 = por %p68_p10, %p67_p9 }
  0x19   :  { %p70_p12 = pnand %p69_p11, %p63_p8 }
  0x1b   :  { %73 = shalt.err (!%p70_p12)
}
  0x1c   :  { %s74_s23 = scalar_lea.hbm %s125_s1, 128 }
  0x1d   :  { %p75_p13 = scmp.ne.s32.totalorder %s125_s1, %s74_s23  ;;  %p78_p0 = scmp.lt.u32.totalorder %s74_s23, %s125_s1 }
  0x1f   :  { %p80_p1 = pnand %p78_p0, %p75_p13 }
  0x21   :  { %83 = shalt.err (!%p80_p1)
}
  0x22   :  { %32 = dma.vmem_to_hbm [thread:$0]  %s30_s19, 128, %s125_s1, [#allocation4]  }
  0x23   :  { %86 = dma.done.wait [#allocation4], 128  }
  0x24   :  { %87 = vsyncadd [#allocation4], 4294967168 }
  0x25   :  { %36 = vsyncpa [#allocation3], 1 }
  0x26   :  { %37 = vsyncpa [#allocation4], 1 }

// kernel: tpu_custom_call.1
= control target key start
LH: loop header
LB: loop body
LE: loop exit
PB: predicated region body
PF: predicated region fallthrough
CT: control target
= control target key end

     0   :  { %s2982_s0 = inlined_call_operand.hbm [shape: bf16[2,512,128], index: 0, kind: input, shape index: {}]   ;;  %s2983_s1 = inlined_call_operand.hbm [shape: bf16[128,384], index: 1, kind: input, shape index: {}]   ;;  %s2984_s2 = inlined_call_operand.hbm [shape: bf16[128,128], index: 2, kind: input, shape index: {}]   ;;  %s2985_s3 = inlined_call_operand.hbm [shape: bf16[128,128], index: 3, kind: input, shape index: {}]   ;;  %s2986_s4 = inlined_call_operand.hbm [shape: f32[2,512,128], index: 4, kind: output, shape index: {}]  }
   0x1   :  { %2996 = sst [smem:[#allocation19_spill]] %s2983_s1 }
   0x2   :  { %2997 = sst [smem:[#allocation20_spill]] %s2984_s2 }
   0x3   :  { %2998 = sst [smem:[#allocation21_spill]] %s2985_s3 }
   0x4   :  { %9 = vsyncpa [#allocation4], 0 }
   0x5   :  { %11 = vsyncpa [#allocation4 + $0x1], 0 }
   0x6   :  { %12 = vsyncpa [#allocation7], 0 }
   0x7   :  { %13 = vsyncpa [#allocation10], 0 }
   0x8   :  { %14 = vsyncpa [#allocation5], 0 }
   0x9   :  { %16 = vsyncpa [#allocation5 + $0x1], 0  ;;  %s2464_s15 = smov 0   ;;  %s2466_s16 = smov 0  }
   0xa   :  { %s2468_s17 = smov 0   ;;  %s2470_s18 = smov 0  }
   0xb   :  { %s2472_s19 = smov 0   ;;  %s2474_s20 = smov 0  }
   0xc   :  { %s2476_s21 = smov 0   ;;  %s2478_s22 = smov 0  }
   0xd LB: > { %2999 = sst [smem:[#allocation16_spill]] %s2396_s15  ;;  %s1686_s23 = sadd.s32 4294967295, %s2424_s22   ;;  %s2424_s22 = sphi %s2478_s22, %s22_s22   ;;  %s2420_s21 = sphi %s2476_s21, %s3031_s21   ;;  %s2416_s20 = sphi %s2474_s20, %s3030_s20   ;;  %s2412_s19 = sphi %s2472_s19, %s3029_s19   ;;  %s2408_s18 = sphi %s2470_s18, %s3028_s18   ;;  %s2404_s17 = sphi %s2468_s17, %s3027_s17   ;;  %s2400_s16 = sphi %s2466_s16, %s3026_s16   ;;  %s2396_s15 = sphi %s2464_s15, %s3025_s15  }
   0xe   : > { %s1687_s24 = sadd.s32 4294967294, %s2424_s22   ;;  %p56_p0 = scmp.ne.s32.totalorder %s2400_s16, %s2396_s15 }
   0xf   : > { %p2508_p1 = scmp.eq.s32.totalorder %s1686_s23, 0  ;;  %p2512_p2 = scmp.eq.s32.totalorder %s1686_s23, 3 }
  0x10   : > { %p151_p3 = scmp.eq.s32.totalorder %s1687_s24, 3  ;;  %p1688_p5 = scmp.ge.s32.totalorder %s2424_s22, 1 }
  0x11   : > { %s3000_s25 = scalar_select %p2508_p1, 1, 0 }
  0x12   : > { %s3001_s26 = scalar_select %p2512_p2, 1, 0 }
  0x13   : > { %p2518_p4 = por %p2508_p1, %p56_p0  ;;  %p2523_p6 = por %p151_p3, %p56_p0 }
  0x14   : > { %p158_p7 = scmp.lt.s32.totalorder %s2424_s22, 5  ;;  %s2426_s30 = smov [#allocation6]  }
  0x15   : > { %s3002_s27 = scalar_select %p2518_p4, 1, 0 }
  0x16   : > { %s3003_s28 = scalar_select %p2523_p6, 1, 0 }
  0x17   : > { %p2528_p8 = pnand %p1688_p5, %p158_p7  ;;  %s170_s5 = sshll.u32 %s2426_s30, 4  ;;  %s171_s5 = int_to_ptr.vmem [resolvable:$true] %s170_s5 }
  0x18   : > { %3004 = sst [smem:[#allocation17_spill]] %s3003_s28  ;;  %s2427_s7 = smov [#allocation8]  }
  0x19   : > { %s3005_s29 = scalar_select %p2528_p8, 1, 0 }
  0x1a   : > { %p2039_p9 = pneg %p2528_p8  ;;  %s183_s8 = sshll.u32 %s2427_s7, 4  ;;  %s2540_s8 = int_to_ptr.vmem [resolvable:$true] %s183_s8 }
  0x1b   : > { %s3007_s1 = sld [smem:[#allocation19_spill]] }
  0x1c   : > { %p2536_p10 = pnand %p2039_p9, %p2508_p1 }
  0x1e   : > { %p2550_p12 = pneg %p2536_p10 }
  0x21   : > { %s2204_s11 = scalar_lea.hbm %s3007_s1, 3072 }
  0x22   : > { %p2205_p11 = scmp.ne.s32.totalorder %s3007_s1, %s2204_s11  ;;  %p2211_p3 = scmp.lt.u32.totalorder %s2204_s11, %s3007_s1 }
  0x24   : > { %p2207_p13 = pnand %p2550_p12, %p2205_p11 }
  0x26   : > { %p2208_p0 = pneg %p2207_p13 }
  0x28   : > { %p2213_p5 = pnand %p2211_p3, %p2208_p0 }
  0x2a   : > { %2216 = shalt.err (!%p2213_p5)
}
  0x2b   : > { %s2217_s30 = scalar_lea.vmem %s171_s5, 3072  ;;  %p2225_p1 = scmp.lt.s32.totalorder %s171_s5, %s171_s5 }
  0x2c   : > { %p2218_p7 = scmp.ne.s32.totalorder %s171_s5, %s2217_s30  ;;  %p2226_p4 = scmp.lt.s32.totalorder %s2217_s30, %s2217_s30 }
  0x2e   : > { %p2220_p9 = pnand %p2218_p7, %p2550_p12  ;;  %p2227_p8 = por %p2226_p4, %p2225_p1 }
  0x30   : > { %p2221_p6 = pneg %p2220_p9 }
  0x32   : > { %p2228_p2 = pnand %p2227_p8, %p2221_p6 }
  0x34   : > { %2231 = shalt.err (!%p2228_p2)
}
  0x35   : > { %s2428_s7 = smov 192   ;;  %s2429_s9 = smov 12  }
  0x36   : > { %2042 = dma.hbm_to_vmem [thread:$0]  (!%p2536_p10), %s3007_s1, 3072, %s171_s5, [#allocation7], %s2428_s7, %s2428_s7, %s2429_s9  }
  0x37   : > { %s3009_s2 = sld [smem:[#allocation20_spill]] }
  0x3d   : > { %s2232_s23 = scalar_lea.hbm %s3009_s2, 1024 }
  0x3e   : > { %p2233_p11 = scmp.ne.s32.totalorder %s3009_s2, %s2232_s23  ;;  %p2239_p4 = scmp.lt.u32.totalorder %s2232_s23, %s3009_s2 }
  0x40   : > { %p2235_p1 = pnand %p2233_p11, %p2550_p12 }
  0x42   : > { %p2236_p2 = pneg %p2235_p1 }
  0x44   : > { %p2241_p6 = pnand %p2239_p4, %p2236_p2 }
  0x46   : > { %2244 = shalt.err (!%p2241_p6)
}
  0x47   : > { %s2245_s5 = scalar_lea.vmem %s2540_s8, 1024  ;;  %p2253_p3 = scmp.lt.s32.totalorder %s2540_s8, %s2540_s8 }
  0x48   : > { %p2246_p8 = scmp.ne.s32.totalorder %s2540_s8, %s2245_s5  ;;  %p2254_p5 = scmp.lt.s32.totalorder %s2245_s5, %s2245_s5 }
  0x4a   : > { %p2248_p13 = pnand %p2246_p8, %p2550_p12  ;;  %p2255_p7 = por %p2254_p5, %p2253_p3 }
  0x4c   : > { %p2249_p0 = pneg %p2248_p13 }
  0x4e   : > { %p2256_p9 = pnand %p2255_p7, %p2249_p0 }
  0x50   : > { %2259 = shalt.err (!%p2256_p9)
}
  0x51   : > { %s2993_s28 = smov 64   ;;  %s2994_s15 = smov 4  }
  0x52   : > { %2045 = dma.hbm_to_vmem [thread:$0]  (!%p2536_p10), %s3009_s2, 1024, %s2540_s8, [#allocation7], %s2993_s28, %s2993_s28, %s2994_s15  }
  0x53   : > { %s2432_s10 = smov [#allocation9]   ;;  %s3010_s3 = sld [smem:[#allocation21_spill]] }
  0x54   : > { %s196_s11 = sshll.u32 %s2432_s10, 4  ;;  %s197_s11 = int_to_ptr.vmem [resolvable:$true] %s196_s11 }
  0x59   : > { %s2260_s23 = scalar_lea.hbm %s3010_s3, 1024 }
  0x5a   : > { %p2261_p11 = scmp.ne.s32.totalorder %s3010_s3, %s2260_s23  ;;  %p2267_p4 = scmp.lt.u32.totalorder %s2260_s23, %s3010_s3 }
  0x5c   : > { %p2263_p1 = pnand %p2261_p11, %p2550_p12 }
  0x5e   : > { %p2264_p2 = pneg %p2263_p1 }
  0x60   : > { %p2269_p6 = pnand %p2267_p4, %p2264_p2 }
  0x62   : > { %2272 = shalt.err (!%p2269_p6)
}
  0x63   : > { %s2273_s8 = scalar_lea.vmem %s197_s11, 1024  ;;  %p2281_p3 = scmp.lt.s32.totalorder %s197_s11, %s197_s11 }
  0x64   : > { %p2274_p8 = scmp.ne.s32.totalorder %s197_s11, %s2273_s8  ;;  %p2282_p5 = scmp.lt.s32.totalorder %s2273_s8, %s2273_s8 }
  0x66   : > { %p2276_p13 = pnand %p2274_p8, %p2550_p12  ;;  %p2283_p7 = por %p2282_p5, %p2281_p3 }
  0x68   : > { %p2277_p0 = pneg %p2276_p13 }
  0x6a   : > { %p2284_p9 = pnand %p2283_p7, %p2277_p0 }
  0x6c   : > { %2287 = shalt.err (!%p2284_p9)
}
  0x6d   : > { %2048 = dma.hbm_to_vmem [thread:$0]  (!%p2536_p10), %s3010_s3, 1024, %s197_s11, [#allocation10], %s2993_s28, %s2993_s28, %s2994_s15  }
  0x6e   : > { %s31_s6 = sadd.s32 1, %s2416_s20  ;;  %s34_s14 = sadd.s32 1, %s2420_s21 }
  0x6f   : > { %p32_p12 = scmp.ge.s32.totalorder %s31_s6, 2  ;;  %s43_s9 = sadd.s32 1, %s2404_s17 }
  0x70   : > { %p50_p11 = scmp.ne.s32.totalorder %s2404_s17, %s2400_s16  ;;  %p51_p1 = scmp.eq.s32.totalorder %s2424_s22, 0 }
  0x71   : > { %s3033_s6 = smov (%p32_p12, %s31_s6), 0  ;;  %s3035_s14 = smov (!%p32_p12, %s34_s14), %s2420_s21 }
  0x72   : > { %s39_s10 = ssub.s32 %s2416_s20, %s3033_s6  ;;  %p36_p2 = scmp.ge.s32.totalorder %s3035_s14, 2 }
  0x73   : > { %p3011_p4 = scmp.ne.s32.totalorder %s3001_s26, 0  ;;  %p2630_p10 = por %p51_p1, %p50_p11 }
  0x74   : > { %p2060_p8 = scmp.lt.s32.totalorder %s2424_s22, 4  ;;  %s3037_s14 = smov (%p36_p2, %s3035_s14), 0 }
  0x75   : > { %p2626_p6 = por %p3011_p4, %p50_p11  ;;  %3014 = sst [smem:[#allocation18_spill]] %s3037_s14 }
  0x76   : > { %s210_s13 = sand.u32 1, %s2404_s17   ;;  %s1694_s23 = sshll.u32 %s2416_s20, 5 }
  0x77   : > { %s38_s24 = ssub.s32 %s2420_s21, %s3037_s14  ;;  %s1693_s5 = sshll.u32 %s210_s13, 7 }
  0x78   : > { %s40_s30 = sor.u32 %s39_s10, %s38_s24  ;;  %s1695_s26 = sshll.u32 %s2420_s21, 6 }
  0x79   : > { %p41_p13 = scmp.eq.s32.totalorder %s40_s30, 0  ;;  %s214_s8 = scalar_lea.vmem [#allocation3], %s1693_s5 }
  0x7a   : > { %s223_s1 = sshll.u32 %s214_s8, 4  ;;  %s220_s28 = sadd.s32 %s1695_s26, %s1694_s23  ;;  %s2645_s1 = int_to_ptr.vmem [resolvable:$true] %s223_s1 }
  0x7b   : > { %s2643_s7 = scalar_select %p41_p13, %s2404_s17, %s43_s9  }
  0x7c   : > { %s1696_s15 = sshll.u32 %s220_s28, 6  ;;  %p2651_p0 = pnand %p2060_p8, %p2630_p10 }
  0x7d   : > { %s2658_s10 = scalar_lea.hbm %s2982_s0, %s1696_s15  ;;  %s2660_s9 = scalar_lea.sflag [#allocation4], %s210_s13 }
  0x7e   : > { %s2288_s28 = scalar_lea.hbm %s2658_s10, 2048  ;;  %p2290_p5 = pneg %p2651_p0 }
  0x7f   : > { %p2289_p3 = scmp.ne.s32.totalorder %s2658_s10, %s2288_s28  ;;  %s2293_s14 = scalar_lea.hbm %s2982_s0, 8192 }
  0x80   : > { %p2294_p12 = scmp.lt.u32.totalorder %s2658_s10, %s2982_s0  ;;  %p2295_p11 = scmp.lt.u32.totalorder %s2293_s14, %s2288_s28 }
  0x81   : > { %p2291_p7 = pnand %p2290_p5, %p2289_p3  ;;  %p2297_p2 = scmp.lt.u32.totalorder %s2288_s28, %s2658_s10 }
  0x82   : > { %p2296_p1 = por %p2295_p11, %p2294_p12 }
  0x83   : > { %p2292_p9 = pneg %p2291_p7 }
  0x84   : > { %p2298_p4 = por %p2297_p2, %p2296_p1 }
  0x86   : > { %p2299_p10 = pnand %p2298_p4, %p2292_p9 }
  0x88   : > { %2302 = shalt.err (!%p2299_p10)
}
  0x89   : > { %s2303_s13 = scalar_lea.vmem %s2645_s1, 2048  ;;  %s2433_s24 = smov [#allocation3]  }
  0x8a   : > { %p2304_p8 = scmp.ne.s32.totalorder %s2645_s1, %s2303_s13  ;;  %s2308_s30 = sshll.u32 %s2433_s24, 4  ;;  %s2309_s30 = int_to_ptr.vmem [resolvable:$false] %s2308_s30 }
  0x8b   : > { %s2310_s5 = scalar_lea.vmem %s2309_s30, 4096  ;;  %p2311_p7 = scmp.lt.s32.totalorder %s2645_s1, %s2309_s30 }
  0x8c   : > { %p2306_p13 = pnand %p2304_p8, %p2290_p5  ;;  %p2312_p12 = scmp.lt.s32.totalorder %s2310_s5, %s2303_s13 }
  0x8e   : > { %p2307_p3 = pneg %p2306_p13  ;;  %p2313_p11 = por %p2312_p12, %p2311_p7 }
  0x90   : > { %p2314_p1 = pnand %p2313_p11, %p2307_p3 }
  0x92   : > { %2317 = shalt.err (!%p2314_p1)
}
  0x93   : > { %s3016_s26 = smov 4   ;;  %s3017_s8 = smov 64  }
  0x94   : > { %2052 = dma.hbm_to_vmem [thread:$0]  (!%p2651_p0), %s2658_s10, 2048, %s2645_s1, %s2660_s9, %s3017_s8, %s3017_s8, %s3016_s26  }
  0x95   : > { %p3018_p5 = scmp.ne.s32.totalorder %s3005_s29, 0 }
  0x96   : > { %s2694_s28 = sand.u32 (!%p3018_p5), 1, %s2400_s16   ;;  %p3019_p9 = scmp.ne.s32.totalorder (!%p3018_p5), %s3002_s27, 0 }
  0x97   : > { %235 = sbr.rel (%p3018_p5) target bundleno = 1010 (0x3f2), region = 36  ;;  %s1698_s11 = sshll.u32 (!%p3018_p5), %s2694_s28, 7 }
  0x98   : > { %s238_s3 = scalar_lea.sflag (!%p3018_p5), [#allocation4], %s2694_s28  ;;  %s2698_s14 = scalar_lea.vmem (!%p3018_p5), [#allocation3], %s1698_s11 }
  0x9e   : > { %2379 = dma.done.wait (%p3019_p9), %s238_s3, 2048  }
  0x9f   : > { %2381 = vsyncadd (%p3019_p9), %s238_s3, 4294965248  ;;  %p3020_p0 = scmp.ne.s32.totalorder %s3000_s25, 0 }
  0xa1   : > { %2383 = dma.done.wait (%p3020_p0), [#allocation7], 4096  }
  0xa2   : > { %2385 = vsyncadd (%p3020_p0), [#allocation7], 4294963200 }
  0xa3   : > { %2387 = dma.done.wait (%p3020_p0), [#allocation10], 1024  }
  0xa4   : > { %2389 = vsyncadd (%p3020_p0), [#allocation10], 4294966272  ;;  %s1702_s2 = sshll.u32 %s2694_s28, 8  ;;  %p1703_p2 = scmp.ne.s32.totalorder %s2408_s18, 0 }
  0xa5   : > { %s2713_s29 = scalar_lea.vmem [#allocation11], %s1702_s2  ;;  %v2434_v0 = vmov (!%p1703_p2), 0.0  }
  0xa6   : > { %284 = sbr.rel (%p1703_p2) target bundleno = 173 (0xad), region = 56  ;;  %285 = vst [vmem:[#allocation2] sm:$0x1] (!%p1703_p2), %v2434_v0 }
  0xad PF: > { %v2140_v1 = vld [vmem:[#allocation6 + $0x4] ss:$12 sps:$4 sm:$0xff]   ;;  %v2142_v2 = vld [vmem:[#allocation6] ss:$12 sps:$4 sm:$0xff]   ;;  %v2435_v3 = vmov 0   ;;  %v2176_v31 = vld [vmem:[%s2698_s14 + $0x18] sm:$0xff]  }
  0xae   : > { %606 = vmatprep.mubr.bf16.mxu0 %v2435_v3  ;;  %726 = vmatprep.mubr.bf16.mxu1 %v2435_v3  ;;  %v2143_v4 = vld [vmem:[#allocation6 + $0x1c] ss:$12 sps:$4 sm:$0xff]   ;;  %v2145_v5 = vld [vmem:[#allocation6 + $0x18] ss:$12 sps:$4 sm:$0xff]   ;;  %v2146_v6 = vld [vmem:[#allocation6 + $0x34] ss:$12 sps:$4 sm:$0xff]  }
  0xaf   : > { %574 = vmatprep.subr.bf16.mxu0 %v2140_v1  ;;  %2007 = vmatprep.subr.bf16.mxu1 %v2140_v1  ;;  %v2148_v7 = vld [vmem:[#allocation6 + $0x30] ss:$12 sps:$4 sm:$0xff]   ;;  %v2149_v8 = vld [vmem:[#allocation6 + $0x4c] ss:$12 sps:$4 sm:$0xff]   ;;  %v2151_v9 = vld [vmem:[#allocation6 + $0x48] ss:$12 sps:$4 sm:$0xff]  }
  0xb0   : > { %575 = vmatpush1.bf16.msra.mxu0 %v2142_v2  ;;  %2015 = vmatpush1.bf16.msra.mxu1 %v2142_v2  ;;  %v2152_v10 = vld [vmem:[#allocation6 + $0x64] ss:$12 sps:$4 sm:$0xff]   ;;  %v2154_v11 = vld [vmem:[#allocation6 + $0x60] ss:$12 sps:$4 sm:$0xff]   ;;  %v2155_v12 = vld [vmem:[#allocation6 + $0x7c] ss:$12 sps:$4 sm:$0xff]  }
  0xb1   : > { %576 = vmatprep.subr.bf16.mxu0 %v2143_v4  ;;  %2008 = vmatprep.subr.bf16.mxu1 %v2143_v4  ;;  %v2157_v13 = vld [vmem:[#allocation6 + $0x78] ss:$12 sps:$4 sm:$0xff]   ;;  %v2158_v14 = vld [vmem:[#allocation6 + $0x94] ss:$12 sps:$4 sm:$0xff]   ;;  %v2160_v15 = vld [vmem:[#allocation6 + $0x90] ss:$12 sps:$4 sm:$0xff]  }
  0xb2   : > { %v2161_v16 = vld [vmem:[#allocation6 + $0xac] ss:$12 sps:$4 sm:$0xff]   ;;  %v2163_v17 = vld [vmem:[#allocation6 + $0xa8] ss:$12 sps:$4 sm:$0xff]   ;;  %v2164_v19 = vld [vmem:[%s2698_s14] sm:$0xff]   ;;  %s1762_s25 = sshll.u32 %s2408_s18, 5 }
  0xb3   : > { %v2166_v18 = vld [vmem:[#allocation6 + $0x8] ss:$12 sps:$4 sm:$0xff]   ;;  %v2720_v20 = vld [vmem:[%s2698_s14 + $0x60] sm:$0xff]   ;;  %v2171_v25 = vld [vmem:[#allocation6 + $0x50] ss:$12 sps:$4 sm:$0xff]   ;;  %s1763_s27 = sshll.u32 %s2412_s19, 6 }
  0xb4   : > { %577 = vmatpush1.bf16.msra.mxu0 %v2145_v5  ;;  %2016 = vmatpush1.bf16.msra.mxu1 %v2145_v5  ;;  %v2167_v21 = vld [vmem:[#allocation6 + $0x20] ss:$12 sps:$4 sm:$0xff]   ;;  %v2170_v22 = vld [vmem:[#allocation6 + $0x38] ss:$12 sps:$4 sm:$0xff]   ;;  %v2174_v26 = vld [vmem:[#allocation6 + $0x68] ss:$12 sps:$4 sm:$0xff]   ;;  %s1564_s1 = sadd.s32 %s1763_s27, %s1762_s25 }
  0xb5   : > { %578 = vmatprep.subr.bf16.mxu0 %v2146_v6  ;;  %2009 = vmatprep.subr.bf16.mxu1 %v2146_v6  ;;  %v2168_v23 = vld [vmem:[%s2698_s14 + $0x8] sm:$0xff]   ;;  %v2172_v27 = vld [vmem:[%s2698_s14 + $0x10] sm:$0xff]   ;;  %v2178_v30 = vld [vmem:[#allocation6 + $0x98] ss:$12 sps:$4 sm:$0xff]   ;;  %s1764_s10 = sshll.u32 %s1564_s1, 7  ;;  %s1567_s9 = sshll.u32 %s2713_s29, 4  ;;  %s2925_s9 = int_to_ptr.vmem [resolvable:$true] %s1567_s9 }
  0xb6   : > { %v2727_v24 = vld [vmem:[%s2698_s14 + $0x68] sm:$0xff]   ;;  %v2173_v28 = vld [vmem:[%s2698_s14 + $0x70] sm:$0xff]   ;;  %v2177_v32 = vld [vmem:[%s2698_s14 + $0x78] sm:$0xff]   ;;  %s2923_s15 = scalar_lea.hbm %s2986_s4, %s1764_s10  ;;  %s1552_s23 = scalar_lea.sflag [#allocation5], %s2694_s28 }
  0xb7   : > { %v2175_v29 = vld [vmem:[#allocation6 + $0x80] ss:$12 sps:$4 sm:$0xff]   ;;  %v2179_v33 = vld [vmem:[#allocation6 + $0xb0] ss:$12 sps:$4 sm:$0xff]   ;;  %s2318_s13 = scalar_lea.vmem %s2925_s9, 4096  ;;  %s2436_s24 = smov [#allocation11]  }
  0xb8   : > { %579 = vmatpush1.bf16.msra.mxu0 %v2148_v7  ;;  %2017 = vmatpush1.bf16.msra.mxu1 %v2148_v7  ;;  %v2180_v34 = vld [vmem:[%s2698_s14 + $0x20] sm:$0xff]   ;;  %v2181_v35 = vld [vmem:[%s2698_s14 + $0x28] sm:$0xff]   ;;  %v2182_v36 = vld [vmem:[%s2698_s14 + $0x30] sm:$0xff]   ;;  %p2319_p4 = scmp.ne.s32.totalorder %s2925_s9, %s2318_s13  ;;  %s2322_s30 = sshll.u32 %s2436_s24, 4  ;;  %s2323_s30 = int_to_ptr.vmem [resolvable:$false] %s2322_s30 }
  0xb9   : > { %580 = vmatprep.subr.bf16.mxu0 %v2149_v8  ;;  %2010 = vmatprep.subr.bf16.mxu1 %v2149_v8  ;;  %v2183_v37 = vld [vmem:[%s2698_s14 + $0x38] sm:$0xff]   ;;  %v2184_v38 = vld [vmem:[%s2698_s14 + $0x40] sm:$0xff]   ;;  %v2185_v39 = vld [vmem:[%s2698_s14 + $0x48] sm:$0xff]   ;;  %s2324_s5 = scalar_lea.vmem %s2323_s30, 8192  ;;  %p2325_p13 = scmp.lt.s32.totalorder %s2925_s9, %s2323_s30 }
  0xba   : > { %v2186_v40 = vld [vmem:[%s2698_s14 + $0x50] sm:$0xff]   ;;  %v2187_v41 = vld [vmem:[%s2698_s14 + $0x58] sm:$0xff]   ;;  %v2756_v42 = vld [vmem:[#allocation8] sm:$0xff]   ;;  %p2320_p10 = pnand %p2319_p4, %p2626_p6  ;;  %p2326_p3 = scmp.lt.s32.totalorder %s2324_s5, %s2318_s13 }
  0xbb   : > { %v2196_v59 = vld [vmem:[#allocation9] sm:$0xff]   ;;  %v2197_v60 = vld [vmem:[#allocation9 + $0x8] sm:$0xff]   ;;  %v2198_v63 = vld [vmem:[#allocation9 + $0x10] sm:$0xff]  }
  0xbc   : > { %581 = vmatpush1.bf16.msra.mxu0 %v2151_v9  ;;  %2018 = vmatpush1.bf16.msra.mxu1 %v2151_v9  ;;  %v2199_v6 = vld [vmem:[#allocation9 + $0x18] sm:$0xff]   ;;  %v2200_v9 = vld [vmem:[#allocation9 + $0x20] sm:$0xff]   ;;  %p2321_p8 = pneg %p2320_p10  ;;  %p2327_p7 = por %p2326_p3, %p2325_p13 }
  0xbd   : > { %582 = vmatprep.subr.bf16.mxu0 %v2152_v10  ;;  %2011 = vmatprep.subr.bf16.mxu1 %v2152_v10 }
  0xbe   : > { %p2328_p12 = pnand %p2327_p7, %p2321_p8 }
  0xc0   : > { %583 = vmatpush1.bf16.msra.mxu0 %v2154_v11  ;;  %2019 = vmatpush1.bf16.msra.mxu1 %v2154_v11 }
  0xc1   : > { %584 = vmatprep.subr.bf16.mxu0 %v2155_v12  ;;  %2012 = vmatprep.subr.bf16.mxu1 %v2155_v12 }
  0xc4   : > { %585 = vmatpush1.bf16.msra.mxu0 %v2157_v13  ;;  %2020 = vmatpush1.bf16.msra.mxu1 %v2157_v13 }
  0xc5   : > { %586 = vmatprep.subr.bf16.mxu0 %v2158_v14  ;;  %2013 = vmatprep.subr.bf16.mxu1 %v2158_v14 }
  0xc8   : > { %587 = vmatpush1.bf16.msra.mxu0 %v2160_v15  ;;  %2021 = vmatpush1.bf16.msra.mxu1 %v2160_v15 }
  0xc9   : > { %588 = vmatprep.subr.bf16.mxu0 %v2161_v16  ;;  %2014 = vmatprep.subr.bf16.mxu1 %v2161_v16  ;;  %v2201_v16 = vld [vmem:[#allocation9 + $0x28] sm:$0xff]  }
  0xcc   : > { %589 = vmatpush1.bf16.msra.mxu0 %v2163_v17  ;;  %2022 = vmatpush1.bf16.msra.mxu1 %v2163_v17 }
  0xcd   : > { %1847 = vmatprep.subr.bf16.mxu1 %v2166_v18  ;;  %1959 = vmatprep.subr.bf16.mxu0 %v2196_v59 }
  0xcf   : > { %607 = vmatmul.mubr.bf16.vlgmr.msra.gmra.mrb[0].mxu0 %v2164_v19  ;;  %727 = vmatmul.mubr.bf16.vlgmr.msra.gmra.mrb[0].mxu1 %v2720_v20 }
  0xd0   : > { %1848 = vmatpush3.bf16.msra.mxu1 %v2166_v18  ;;  %616 = vmatprep.mubr.bf16.mxu0 %v2435_v3 }
  0xd1   : > { %1849 = vmatprep.subr.bf16.mxu1 %v2167_v21  ;;  %736 = vmatprep.mubr.bf16.mxu1 %v2435_v3 }
  0xd2   : > { %1960 = vmatpush3.bf16.msra.mxu0 %v2196_v59 }
  0xd3   : > { %1961 = vmatprep.subr.bf16.mxu0 %v2197_v60 }
  0xd4   : > { %1850 = vmatpush3.bf16.msra.mxu1 %v2167_v21 }
  0xd5   : > { %1851 = vmatprep.subr.bf16.mxu1 %v2170_v22 }
  0xd6   : > { %1962 = vmatpush3.bf16.msra.mxu0 %v2197_v60 }
  0xd7   : > { %617 = vmatmul.mubr.bf16.gmra.mrb[4].mxu0 %v2168_v23  ;;  %737 = vmatmul.mubr.bf16.gmra.mrb[4].mxu1 %v2727_v24 }
  0xd8   : > { %1852 = vmatpush3.bf16.msra.mxu1 %v2170_v22  ;;  %626 = vmatprep.mubr.bf16.mxu0 %v2435_v3 }
  0xd9   : > { %1853 = vmatprep.subr.bf16.mxu1 %v2171_v25  ;;  %746 = vmatprep.mubr.bf16.mxu1 %v2435_v3 }
  0xda   : > { %1963 = vmatprep.subr.bf16.mxu0 %v2198_v63 }
  0xdb   : > { %1964 = vmatpush3.bf16.msra.mxu0 %v2198_v63 }
  0xdc   : > { %1854 = vmatpush3.bf16.msra.mxu1 %v2171_v25  ;;  %1965 = vmatprep.subr.bf16.mxu0 %v2199_v6 }
  0xdd   : > { %1855 = vmatprep.subr.bf16.mxu1 %v2174_v26 }
  0xdf   : > { %627 = vmatmul.mubr.bf16.gmra.mrb[8].mxu0 %v2172_v27  ;;  %747 = vmatmul.mubr.bf16.gmra.mrb[8].mxu1 %v2173_v28 }
  0xe0   : > { %1856 = vmatpush3.bf16.msra.mxu1 %v2174_v26  ;;  %636 = vmatprep.mubr.bf16.mxu0 %v2435_v3 }
  0xe1   : > { %1857 = vmatprep.subr.bf16.mxu1 %v2175_v29  ;;  %756 = vmatprep.mubr.bf16.mxu1 %v2435_v3 }
  0xe2   : > { %1966 = vmatpush3.bf16.msra.mxu0 %v2199_v6 }
  0xe3   : > { %1967 = vmatprep.subr.bf16.mxu0 %v2200_v9 }
  0xe4   : > { %1858 = vmatpush3.bf16.msra.mxu1 %v2175_v29 }
  0xe5   : > { %1859 = vmatprep.subr.bf16.mxu1 %v2178_v30 }
  0xe6   : > { %1968 = vmatpush3.bf16.msra.mxu0 %v2200_v9 }
  0xe7   : > { %637 = vmatmul.mubr.bf16.gmra.mrb[12].mxu0 %v2176_v31  ;;  %757 = vmatmul.mubr.bf16.gmra.mrb[12].mxu1 %v2177_v32 }
  0xe8   : > { %1860 = vmatpush3.bf16.msra.mxu1 %v2178_v30  ;;  %646 = vmatprep.mubr.bf16.mxu0 %v2435_v3 }
  0xe9   : > { %1861 = vmatprep.subr.bf16.mxu1 %v2179_v33  ;;  %1863 = vmatprep.mubr.bf16.mxu1 %v2164_v19 }
  0xea   : > { %1969 = vmatprep.subr.bf16.mxu0 %v2201_v16 }
  0xeb   : > { %1970 = vmatpush3.bf16.msra.mxu0 %v2201_v16 }
  0xec   : > { %1862 = vmatpush3.bf16.msra.mxu1 %v2179_v33 }
  0xef   : > { %647 = vmatmul.mubr.bf16.gmra.mrb[16].mxu0 %v2180_v34  ;;  %1864 = vmatmul.mubr.bf16.vlgmr.msra.gmra.mrb[16].mxu1 %v2168_v23 }
  0xf0   : > { %656 = vmatprep.mubr.bf16.mxu0 %v2435_v3  ;;  %1867 = vmatprep.mubr.bf16.mxu1 %v2172_v27 }
  0xf7   : > { %657 = vmatmul.mubr.bf16.gmra.mrb[20].mxu0 %v2181_v35  ;;  %1868 = vmatmul.mubr.bf16.gmra.mrb[20].mxu1 %v2176_v31 }
  0xf8   : > { %666 = vmatprep.mubr.bf16.mxu0 %v2435_v3  ;;  %1871 = vmatprep.mubr.bf16.mxu1 %v2180_v34 }
  0xff   : > { %667 = vmatmul.mubr.bf16.gmra.mrb[24].mxu0 %v2182_v36  ;;  %1872 = vmatmul.mubr.bf16.gmra.mrb[24].mxu1 %v2181_v35 }
 0x100   : > { %676 = vmatprep.mubr.bf16.mxu0 %v2435_v3  ;;  %1875 = vmatprep.mubr.bf16.mxu1 %v2182_v36 }
 0x107   : > { %677 = vmatmul.mubr.bf16.gmra.mrb[28].mxu0 %v2183_v37  ;;  %1876 = vmatmul.mubr.bf16.gmra.mrb[28].mxu1 %v2183_v37 }
 0x108   : > { %686 = vmatprep.mubr.bf16.mxu0 %v2435_v3  ;;  %1879 = vmatprep.mubr.bf16.mxu1 %v2184_v38 }
 0x10f   : > { %687 = vmatmul.mubr.bf16.gmra.mrb[32].mxu0 %v2184_v38  ;;  %1880 = vmatmul.mubr.bf16.gmra.mrb[32].mxu1 %v2185_v39 }
 0x110   : > { %696 = vmatprep.mubr.bf16.mxu0 %v2435_v3  ;;  %1883 = vmatprep.mubr.bf16.mxu1 %v2186_v40 }
 0x117   : > { %697 = vmatmul.mubr.bf16.gmra.mrb[36].mxu0 %v2185_v39  ;;  %1884 = vmatmul.mubr.bf16.gmra.mrb[36].mxu1 %v2187_v41 }
 0x118   : > { %706 = vmatprep.mubr.bf16.mxu0 %v2435_v3  ;;  %1887 = vmatprep.mubr.bf16.mxu1 %v2720_v20 }
 0x11f   : > { %707 = vmatmul.mubr.bf16.gmra.mrb[40].mxu0 %v2186_v40  ;;  %1888 = vmatmul.mubr.bf16.gmra.mrb[40].mxu1 %v2727_v24 }
 0x120   : > { %716 = vmatprep.mubr.bf16.mxu0 %v2435_v3  ;;  %1891 = vmatprep.mubr.bf16.mxu1 %v2173_v28 }
 0x127   : > { %717 = vmatmul.mubr.bf16.gmra.mrb[44].mxu0 %v2187_v41  ;;  %1892 = vmatmul.mubr.bf16.gmra.mrb[44].mxu1 %v2177_v32 }
 0x128   : > { %1911 = vmatprep.mubr.bf16.mxu1 %v2756_v42 }
 0x1a2   : > { %v2759_v43 = vpop.f32.mrb[0].mxu1  ;;  %v2761_v44 = vpop.f32.mrb[0].mxu0 }
 0x1a3   : > { %v2763_v45 = vpop.f32.mrb[1].mxu1  ;;  %v610_v46 = vpop.f32.mrb[1].mxu0 }
 0x1a4   : > { %v2765_v47 = vpop.f32.mrb[2].mxu1  ;;  %v2767_v48 = vpop.f32.mrb[2].mxu0 }
 0x1a5   : > { %v2769_v49 = vpop.f32.mrb[3].mxu1  ;;  %v614_v50 = vpop.f32.mrb[3].mxu0 }
 0x1aa   : > { %v2771_v51 = vpop.f32.mrb[4].mxu1  ;;  %v2773_v52 = vpop.f32.mrb[4].mxu0 }
 0x1ab   : > { %v2775_v53 = vpop.f32.mrb[5].mxu1  ;;  %v620_v54 = vpop.f32.mrb[5].mxu0 }
 0x1ac   : > { %v2777_v55 = vpop.f32.mrb[6].mxu1  ;;  %v2779_v56 = vpop.f32.mrb[6].mxu0 }
 0x1ad   : > { %v2781_v57 = vpop.f32.mrb[7].mxu1  ;;  %v624_v58 = vpop.f32.mrb[7].mxu0 }
 0x1b2   : > { %v2783_v61 = vpop.f32.mrb[8].mxu1  ;;  %v2785_v62 = vpop.f32.mrb[8].mxu0 }
 0x1b3   : > { %v2787_v0 = vpop.f32.mrb[9].mxu1  ;;  %v630_v1 = vpop.f32.mrb[9].mxu0 }
 0x1b4   : > { %v2789_v2 = vpop.f32.mrb[10].mxu1  ;;  %v2791_v3 = vpop.f32.mrb[10].mxu0 }
 0x1b5   : > { %v2793_v4 = vpop.f32.mrb[11].mxu1  ;;  %v634_v5 = vpop.f32.mrb[11].mxu0 }
 0x1ba   : > { %v2795_v7 = vpop.f32.mrb[12].mxu1  ;;  %v2797_v8 = vpop.f32.mrb[12].mxu0 }
 0x1bb   : > { %v2799_v10 = vpop.f32.mrb[13].mxu1  ;;  %v640_v11 = vpop.f32.mrb[13].mxu0 }
 0x1bc   : > { %v2801_v12 = vpop.f32.mrb[14].mxu1  ;;  %v2803_v13 = vpop.f32.mrb[14].mxu0 }
 0x1bd   : > { %v2805_v14 = vpop.f32.mrb[15].mxu1  ;;  %v644_v15 = vpop.f32.mrb[15].mxu0 }
 0x1c2   : > { %v1865_v17 = vpop.f32.mrb[16].mxu1  ;;  %v2807_v18 = vpop.f32.mrb[16].mxu0 }
 0x1c3   : > { %v930_v19 = vmul.f32 %v1865_v17, %v620_v54  ;;  %v801_v20 = vpop.f32.mrb[17].mxu1  ;;  %v650_v21 = vpop.f32.mrb[17].mxu0 }
 0x1c4   : > { %v928_v22 = vmul.f32 %v801_v20, %v610_v46  ;;  %v1866_v23 = vpop.f32.mrb[18].mxu1  ;;  %v2809_v24 = vpop.f32.mrb[18].mxu0 }
 0x1c5   : > { %v931_v25 = vmul.f32 %v1866_v23, %v624_v58  ;;  %v804_v26 = vpop.f32.mrb[19].mxu1  ;;  %v654_v27 = vpop.f32.mrb[19].mxu0 }
 0x1c6   : > { %v929_v28 = vmul.f32 %v804_v26, %v614_v50 }
 0x1c7   : > { %v961_v29 = vpack.c.bf16 %v931_v25, %v930_v19 }
 0x1c8   : > { %v960_v30 = vpack.c.bf16 %v929_v28, %v928_v22 }
 0x1ca   : > { %v1869_v31 = vpop.f32.mrb[20].mxu1  ;;  %1895 = vmatprep.subr.bf16.mxu1 %v960_v30  ;;  %v2811_v32 = vpop.f32.mrb[20].mxu0 }
 0x1cb   : > { %v817_v33 = vpop.f32.mrb[21].mxu1  ;;  %1896 = vmatpush3.bf16.msra.mxu1 %v960_v30  ;;  %v934_v34 = vmul.f32 %v1869_v31, %v640_v11  ;;  %v660_v35 = vpop.f32.mrb[21].mxu0 }
 0x1cc   : > { %v932_v36 = vmul.f32 %v817_v33, %v630_v1  ;;  %v1870_v37 = vpop.f32.mrb[22].mxu1  ;;  %1897 = vmatprep.subr.bf16.mxu1 %v961_v29  ;;  %v2813_v38 = vpop.f32.mrb[22].mxu0 }
 0x1cd   : > { %v820_v39 = vpop.f32.mrb[23].mxu1  ;;  %v935_v40 = vmul.f32 %v1870_v37, %v644_v15  ;;  %v664_v41 = vpop.f32.mrb[23].mxu0 }
 0x1ce   : > { %v933_v46 = vmul.f32 %v820_v39, %v634_v5 }
 0x1cf   : > { %v963_v50 = vpack.c.bf16 %v935_v40, %v934_v34  ;;  %1898 = vmatpush3.bf16.msra.mxu1 %v961_v29 }
 0x1d0   : > { %v962_v54 = vpack.c.bf16 %v933_v46, %v932_v36 }
 0x1d2   : > { %v1873_v58 = vpop.f32.mrb[24].mxu1  ;;  %1899 = vmatprep.subr.bf16.mxu1 %v962_v54  ;;  %v2815_v59 = vpop.f32.mrb[24].mxu0 }
 0x1d3   : > { %v833_v60 = vpop.f32.mrb[25].mxu1  ;;  %1900 = vmatpush3.bf16.msra.mxu1 %v962_v54  ;;  %v938_v63 = vmul.f32 %v1873_v58, %v660_v35  ;;  %v670_v6 = vpop.f32.mrb[25].mxu0 }
 0x1d4   : > { %v936_v1 = vmul.f32 %v833_v60, %v650_v21  ;;  %v1874_v9 = vpop.f32.mrb[26].mxu1  ;;  %1901 = vmatprep.subr.bf16.mxu1 %v963_v50  ;;  %v2817_v11 = vpop.f32.mrb[26].mxu0 }
 0x1d5   : > { %v836_v16 = vpop.f32.mrb[27].mxu1  ;;  %v939_v15 = vmul.f32 %v1874_v9, %v664_v41  ;;  %v674_v17 = vpop.f32.mrb[27].mxu0 }
 0x1d6   : > { %v937_v5 = vmul.f32 %v836_v16, %v654_v27 }
 0x1d7   : > { %1902 = vmatpush3.bf16.msra.mxu1 %v963_v50  ;;  %v965_v19 = vpack.c.bf16 %v939_v15, %v938_v63  ;;  %v2827_v63 = vld [vmem:[#allocation8 + $0x8] sm:$0xff]  }
 0x1d8   : > { %v964_v20 = vpack.c.bf16 %v937_v5, %v936_v1  ;;  %v2829_v1 = vld [vmem:[#allocation8 + $0x10] sm:$0xff]  }
 0x1da   : > { %v1877_v22 = vpop.f32.mrb[28].mxu1  ;;  %1903 = vmatprep.subr.bf16.mxu1 %v964_v20  ;;  %v2819_v23 = vpop.f32.mrb[28].mxu0 }
 0x1db   : > { %v849_v25 = vpop.f32.mrb[29].mxu1  ;;  %1904 = vmatpush3.bf16.msra.mxu1 %v964_v20  ;;  %v680_v26 = vpop.f32.mrb[29].mxu0 }
 0x1dc   : > { %v940_v28 = vmul.f32 %v849_v25, %v670_v6  ;;  %v1878_v21 = vpop.f32.mrb[30].mxu1  ;;  %1905 = vmatprep.subr.bf16.mxu1 %v965_v19  ;;  %v942_v29 = vmul.f32 %v1877_v22, %v680_v26  ;;  %v2821_v30 = vpop.f32.mrb[30].mxu0 }
 0x1dd   : > { %v852_v31 = vpop.f32.mrb[31].mxu1  ;;  %v684_v33 = vpop.f32.mrb[31].mxu0 }
 0x1de   : > { %v941_v34 = vmul.f32 %v852_v31, %v674_v17  ;;  %v943_v27 = vmul.f32 %v1878_v21, %v684_v33 }
 0x1df   : > { %1906 = vmatpush3.bf16.msra.mxu1 %v965_v19 }
 0x1e0   : > { %v966_v35 = vpack.c.bf16 %v941_v34, %v940_v28  ;;  %v967_v36 = vpack.c.bf16 %v943_v27, %v942_v29  ;;  %v2191_v28 = vld [vmem:[#allocation8 + $0x18] sm:$0xff]   ;;  %v2192_v29 = vld [vmem:[#allocation8 + $0x20] sm:$0xff]  }
 0x1e2   : > { %1907 = vmatprep.subr.bf16.mxu1 %v966_v35  ;;  %v1881_v37 = vpop.f32.mrb[32].mxu1  ;;  %v2823_v39 = vpop.f32.mrb[32].mxu0 }
 0x1e3   : > { %1908 = vmatpush3.bf16.msra.mxu1 %v966_v35  ;;  %v865_v40 = vpop.f32.mrb[33].mxu1  ;;  %v690_v41 = vpop.f32.mrb[33].mxu0 }
 0x1e4   : > { %1909 = vmatprep.subr.bf16.mxu1 %v967_v36  ;;  %v1882_v46 = vpop.f32.mrb[34].mxu1  ;;  %v944_v50 = vmul.f32 %v865_v40, %v690_v41  ;;  %v2825_v54 = vpop.f32.mrb[34].mxu0 }
 0x1e5   : > { %v868_v58 = vpop.f32.mrb[35].mxu1  ;;  %v694_v60 = vpop.f32.mrb[35].mxu0 }
 0x1e6   : > { %v945_v6 = vmul.f32 %v868_v58, %v694_v60 }
 0x1e7   : > { %1910 = vmatpush3.bf16.msra.mxu1 %v967_v36 }
 0x1e8   : > { %v968_v9 = vpack.c.bf16 %v945_v6, %v944_v50 }
 0x1ea   : > { %1912 = vmatmul.mubr.bf16.vlgmr.msra.gmra.mrb[48].mxu1 %v2827_v63  ;;  %v1885_v16 = vpop.f32.mrb[36].mxu1  ;;  %v2832_v15 = vpop.f32.mrb[36].mxu0  ;;  %1927 = vmatprep.subr.bf16.mxu1 %v968_v9 }
 0x1eb   : > { %v881_v17 = vpop.f32.mrb[37].mxu1  ;;  %1915 = vmatprep.mubr.bf16.mxu1 %v2829_v1  ;;  %v700_v5 = vpop.f32.mrb[37].mxu0  ;;  %1928 = vmatpush3.bf16.msra.mxu1 %v968_v9 }
 0x1ec   : > { %v1886_v19 = vpop.f32.mrb[38].mxu1  ;;  %v946_v20 = vmul.f32 %v1881_v37, %v700_v5  ;;  %v2835_v22 = vpop.f32.mrb[38].mxu0  ;;  %v2193_v5 = vld [vmem:[#allocation8 + $0x28] sm:$0xff]  }
 0x1ed   : > { %v884_v25 = vpop.f32.mrb[39].mxu1  ;;  %v704_v26 = vpop.f32.mrb[39].mxu0 }
 0x1ee   : > { %v947_v21 = vmul.f32 %v1882_v46, %v704_v26 }
 0x1f0   : > { %v969_v31 = vpack.c.bf16 %v947_v21, %v946_v20 }
 0x1f2   : > { %v1889_v33 = vpop.f32.mrb[40].mxu1  ;;  %1916 = vmatmul.mubr.bf16.gmra.mrb[52].mxu1 %v2191_v28  ;;  %v2837_v34 = vpop.f32.mrb[40].mxu0  ;;  %1929 = vmatprep.subr.bf16.mxu1 %v969_v31 }
 0x1f3   : > { %v954_v27 = vmul.f32 %v1889_v33, %v2775_v53  ;;  %v897_v35 = vpop.f32.mrb[41].mxu1  ;;  %v710_v36 = vpop.f32.mrb[41].mxu0  ;;  %1919 = vmatprep.mubr.bf16.mxu1 %v2192_v29  ;;  %1930 = vmatpush3.bf16.msra.mxu1 %v969_v31  ;;  %v2194_v53 = vld [vmem:[#allocation8 + $0x30] sm:$0xff]  }
 0x1f4   : > { %v952_v37 = vmul.f32 %v897_v35, %v2763_v45  ;;  %v1890_v40 = vpop.f32.mrb[42].mxu1  ;;  %v948_v41 = vmul.f32 %v881_v17, %v710_v36  ;;  %v2841_v50 = vpop.f32.mrb[42].mxu0 }
 0x1f5   : > { %v955_v46 = vmul.f32 %v1890_v40, %v2781_v57  ;;  %v900_v58 = vpop.f32.mrb[43].mxu1  ;;  %v714_v60 = vpop.f32.mrb[43].mxu0 }
 0x1f6   : > { %v953_v6 = vmul.f32 %v900_v58, %v2769_v49  ;;  %v949_v9 = vmul.f32 %v884_v25, %v714_v60  ;;  %v2195_v58 = vld [vmem:[#allocation8 + $0x38] sm:$0xff]  }
 0x1f7   : > { %v973_v20 = vpack.c.bf16 %v955_v46, %v954_v27 }
 0x1f8   : > { %v972_v26 = vpack.c.bf16 %v953_v6, %v952_v37  ;;  %v970_v21 = vpack.c.bf16 %v949_v9, %v948_v41 }
 0x1fa   : > { %v2845_v33 = vpop.f32.mrb[44].mxu0  ;;  %v1893_v31 = vpop.f32.mrb[44].mxu1  ;;  %1920 = vmatmul.mubr.bf16.gmra.mrb[56].mxu1 %v2193_v5  ;;  %1931 = vmatprep.subr.bf16.mxu1 %v970_v21 }
 0x1fb   : > { %v958_v45 = vmul.f32 %v1893_v31, %v2799_v10  ;;  %v720_v17 = vpop.f32.mrb[45].mxu0  ;;  %v913_v35 = vpop.f32.mrb[45].mxu1  ;;  %1932 = vmatpush3.bf16.msra.mxu1 %v970_v21  ;;  %1923 = vmatprep.mubr.bf16.mxu1 %v2194_v53 }
 0x1fc   : > { %v950_v57 = vmul.f32 %v1885_v16, %v720_v17  ;;  %v956_v49 = vmul.f32 %v913_v35, %v2787_v0  ;;  %v2849_v25 = vpop.f32.mrb[46].mxu0  ;;  %v1894_v27 = vpop.f32.mrb[46].mxu1  ;;  %v2202_v0 = vld [vmem:[#allocation9 + $0x30] sm:$0xff]  }
 0x1fd   : > { %v959_v36 = vmul.f32 %v1894_v27, %v2805_v14  ;;  %v724_v37 = vpop.f32.mrb[47].mxu0  ;;  %v916_v40 = vpop.f32.mrb[47].mxu1  ;;  %1971 = vmatprep.subr.bf16.mxu0 %v2202_v0 }
 0x1fe   : > { %v951_v41 = vmul.f32 %v1886_v19, %v724_v37  ;;  %v957_v46 = vmul.f32 %v916_v40, %v2793_v4  ;;  %1972 = vmatpush3.bf16.msra.mxu0 %v2202_v0  ;;  %v1744_v4 = vld [vmem:[#allocation2] ss:$0 sm:$0xff] }
 0x1ff   : > { %v975_v60 = vpack.c.bf16 %v959_v36, %v958_v45 }
 0x200   : > { %v971_v10 = vpack.c.bf16 %v951_v41, %v950_v57  ;;  %v974_v6 = vpack.c.bf16 %v957_v46, %v956_v49 }
 0x202   : > { %1924 = vmatmul.mubr.bf16.gmra.mrb[60].mxu1 %v2195_v58  ;;  %1933 = vmatprep.subr.bf16.mxu1 %v971_v10 }
 0x203   : > { %1934 = vmatpush3.bf16.msra.mxu1 %v971_v10  ;;  %1943 = vmatprep.mubr.bf16.mxu1 %v2756_v42  ;;  %v2203_v42 = vld [vmem:[#allocation9 + $0x38] sm:$0xff]  }
 0x204   : > { %1935 = vmatprep.subr.bf16.mxu1 %v972_v26  ;;  %1973 = vmatprep.subr.bf16.mxu0 %v2203_v42 }
 0x205   : > { %1974 = vmatpush3.bf16.msra.mxu0 %v2203_v42 }
 0x207   : > { %1936 = vmatpush3.bf16.msra.mxu1 %v972_v26 }
 0x208   : > { %1937 = vmatprep.subr.bf16.mxu1 %v973_v20 }
 0x20b   : > { %1938 = vmatpush3.bf16.msra.mxu1 %v973_v20 }
 0x20c   : > { %1939 = vmatprep.subr.bf16.mxu1 %v974_v6 }
 0x20f   : > { %1940 = vmatpush3.bf16.msra.mxu1 %v974_v6 }
 0x210   : > { %1941 = vmatprep.subr.bf16.mxu1 %v975_v60 }
 0x213   : > { %1942 = vmatpush3.bf16.msra.mxu1 %v975_v60 }
 0x216   : > { %1944 = vmatmul.mubr.bf16.vlgmr.msra.gmra.mrb[64].mxu1 %v2827_v63 }
 0x217   : > { %1947 = vmatprep.mubr.bf16.mxu1 %v2829_v1 }
 0x21e   : > { %1948 = vmatmul.mubr.bf16.gmra.mrb[68].mxu1 %v2191_v28 }
 0x21f   : > { %1951 = vmatprep.mubr.bf16.mxu1 %v2192_v29 }
 0x226   : > { %1952 = vmatmul.mubr.bf16.gmra.mrb[72].mxu1 %v2193_v5 }
 0x227   : > { %1955 = vmatprep.mubr.bf16.mxu1 %v2194_v53 }
 0x22e   : > { %1956 = vmatmul.mubr.bf16.gmra.mrb[76].mxu1 %v2195_v58 }
 0x2bd   : > { %v1913_v14 = vpop.f32.mrb[48].mxu1 }
 0x2be   : > { %v1090_v16 = vadd.f32 %v1913_v14, %v1744_v4  ;;  %v1081_v19 = vpop.f32.mrb[49].mxu1 }
 0x2bf   : > { %v1082_v9 = vadd.f32 %v1744_v4, %v1081_v19  ;;  %v1914_v20 = vpop.f32.mrb[50].mxu1 }
 0x2c0   : > { %v1146_v63 = vmul.f32 %v1090_v16, %v2773_v52  ;;  %v1093_v1 = vadd.f32 %v1914_v20, %v1744_v4  ;;  %v1084_v28 = vpop.f32.mrb[51].mxu1 }
 0x2c1   : > { %v1144_v29 = vmul.f32 %v1082_v9, %v2761_v44  ;;  %v1085_v5 = vadd.f32 %v1744_v4, %v1084_v28 }
 0x2c2   : > { %v1147_v53 = vmul.f32 %v1093_v1, %v2779_v56 }
 0x2c3   : > { %v1145_v26 = vmul.f32 %v1085_v5, %v2767_v48 }
 0x2c4   : > { %v1161_v21 = vpack.c.bf16 %v1147_v53, %v1146_v63 }
 0x2c5   : > { %v1917_v31 = vpop.f32.mrb[52].mxu1  ;;  %v1160_v45 = vpack.c.bf16 %v1145_v26, %v1144_v29  ;;  %v1168_v26 = vlaneseq }
 0x2c6   : > { %v1106_v17 = vadd.f32 %v1917_v31, %v1744_v4  ;;  %v1097_v35 = vpop.f32.mrb[53].mxu1 }
 0x2c7   : > { %v1098_v57 = vadd.f32 %v1744_v4, %v1097_v35  ;;  %v1918_v49 = vpop.f32.mrb[54].mxu1  ;;  %1975 = vmatprep.mubr.bf16.mxu0 %v1160_v45  ;;  %v1169_v45 = vshrl.u32 %v1168_v26, 7 }
 0x2c8   : > { %v1150_v27 = vmul.f32 %v1106_v17, %v2797_v8  ;;  %v1109_v52 = vadd.f32 %v1918_v49, %v1744_v4  ;;  %v1100_v36 = vpop.f32.mrb[55].mxu1  ;;  %1976 = vmatmul.mubr.bf16.vlgmr.msra.gmra.mrb[48].mxu0 %v1161_v21 }
 0x2c9   : > { %v1148_v44 = vmul.f32 %v1098_v57, %v2785_v62  ;;  %v1101_v37 = vadd.f32 %v1744_v4, %v1100_v36  ;;  %v1170_v17 = vsub.s32 7, %v1169_v45 }
 0x2ca   : > { %v1151_v56 = vmul.f32 %v1109_v52, %v2803_v13 }
 0x2cb   : > { %v1149_v48 = vmul.f32 %v1101_v37, %v2791_v3 }
 0x2cc   : > { %v1163_v40 = vpack.c.bf16 %v1151_v56, %v1150_v27 }
 0x2cd   : > { %v1921_v41 = vpop.f32.mrb[56].mxu1  ;;  %v1162_v46 = vpack.c.bf16 %v1149_v48, %v1148_v44 }
 0x2ce   : > { %v1122_v58 = vadd.f32 %v1921_v41, %v1744_v4  ;;  %v1113_v60 = vpop.f32.mrb[57].mxu1 }
 0x2cf   : > { %v1114_v10 = vadd.f32 %v1744_v4, %v1113_v60  ;;  %v1922_v6 = vpop.f32.mrb[58].mxu1  ;;  %1979 = vmatprep.mubr.bf16.mxu0 %v1162_v46 }
 0x2d0   : > { %v1154_v8 = vmul.f32 %v1122_v58, %v2811_v32  ;;  %v1125_v0 = vadd.f32 %v1922_v6, %v1744_v4  ;;  %v1116_v42 = vpop.f32.mrb[59].mxu1  ;;  %1980 = vmatmul.mubr.bf16.gmra.mrb[52].mxu0 %v1163_v40 }
 0x2d1   : > { %v1152_v62 = vmul.f32 %v1114_v10, %v2807_v18  ;;  %v1117_v14 = vadd.f32 %v1744_v4, %v1116_v42 }
 0x2d2   : > { %v1155_v13 = vmul.f32 %v1125_v0, %v2813_v38 }
 0x2d3   : > { %v1153_v3 = vmul.f32 %v1117_v14, %v2809_v24 }
 0x2d4   : > { %v1165_v16 = vpack.c.bf16 %v1155_v13, %v1154_v8 }
 0x2d5   : > { %v1925_v19 = vpop.f32.mrb[60].mxu1  ;;  %v1164_v9 = vpack.c.bf16 %v1153_v3, %v1152_v62 }
 0x2d6   : > { %v1138_v20 = vadd.f32 %v1925_v19, %v1744_v4  ;;  %v1129_v63 = vpop.f32.mrb[61].mxu1 }
 0x2d7   : > { %v1130_v1 = vadd.f32 %v1744_v4, %v1129_v63  ;;  %v1926_v28 = vpop.f32.mrb[62].mxu1  ;;  %1983 = vmatprep.mubr.bf16.mxu0 %v1164_v9 }
 0x2d8   : > { %v1158_v32 = vmul.f32 %v1138_v20, %v2819_v23  ;;  %v1141_v29 = vadd.f32 %v1926_v28, %v1744_v4  ;;  %v1132_v5 = vpop.f32.mrb[63].mxu1  ;;  %1984 = vmatmul.mubr.bf16.gmra.mrb[56].mxu0 %v1165_v16 }
 0x2d9   : > { %v1156_v18 = vmul.f32 %v1130_v1, %v2815_v59  ;;  %v1133_v53 = vadd.f32 %v1744_v4, %v1132_v5 }
 0x2da   : > { %v1159_v38 = vmul.f32 %v1141_v29, %v2821_v30  ;;  %v1171_v35 = vrot.slane %v1141_v29, %v1170_v17 }
 0x2db   : > { %v1157_v24 = vmul.f32 %v1133_v53, %v2817_v11 }
 0x2dc   : > { %v1167_v21 = vpack.c.bf16 %v1159_v38, %v1158_v32 }
 0x2dd   : > { %v1166_v31 = vpack.c.bf16 %v1157_v24, %v1156_v18 }
 0x2df   : > { %1987 = vmatprep.mubr.bf16.mxu0 %v1166_v31 }
 0x2e0   : > { %1988 = vmatmul.mubr.bf16.gmra.mrb[60].mxu0 %v1167_v21 }
 0x2e9   : > { %v1945_v57 = vpop.f32.mrb[64].mxu1 }
 0x2ea   : > { %v1215_v23 = vadd.f32 %v1945_v57, %v1171_v35  ;;  %v1206_v49 = vpop.f32.mrb[65].mxu1 }
 0x2eb   : > { %v1207_v27 = vadd.f32 %v1206_v49, %v1171_v35  ;;  %v1946_v52 = vpop.f32.mrb[66].mxu1 }
 0x2ec   : > { %v1271_v59 = vmul.f32 %v1215_v23, %v2832_v15  ;;  %v1218_v4 = vadd.f32 %v1946_v52, %v1171_v35  ;;  %v1209_v36 = vpop.f32.mrb[67].mxu1 }
 0x2ed   : > { %v1269_v30 = vmul.f32 %v1207_v27, %v2823_v39  ;;  %v1210_v11 = vadd.f32 %v1209_v36, %v1171_v35 }
 0x2ee   : > { %v1272_v44 = vmul.f32 %v1218_v4, %v2835_v22 }
 0x2ef   : > { %v1270_v37 = vmul.f32 %v1210_v11, %v2825_v54 }
 0x2f0   : > { %v1286_v56 = vpack.c.bf16 %v1272_v44, %v1271_v59 }
 0x2f1   : > { %v1949_v48 = vpop.f32.mrb[68].mxu1  ;;  %v1285_v40 = vpack.c.bf16 %v1270_v37, %v1269_v30 }
 0x2f2   : > { %v1231_v41 = vadd.f32 %v1949_v48, %v1171_v35  ;;  %v1222_v46 = vpop.f32.mrb[69].mxu1 }
 0x2f3   : > { %v1223_v58 = vadd.f32 %v1222_v46, %v1171_v35  ;;  %v1950_v60 = vpop.f32.mrb[70].mxu1  ;;  %1991 = vmatprep.mubr.bf16.mxu0 %v1285_v40 }
 0x2f4   : > { %v1275_v10 = vmul.f32 %v1231_v41, %v2845_v33  ;;  %v1234_v15 = vadd.f32 %v1950_v60, %v1171_v35  ;;  %v1225_v6 = vpop.f32.mrb[71].mxu1  ;;  %1992 = vmatmul.mubr.bf16.gmra.mrb[64].mxu0 %v1286_v56 }
 0x2f5   : > { %v1273_v39 = vmul.f32 %v1223_v58, %v2837_v34  ;;  %v1226_v8 = vadd.f32 %v1225_v6, %v1171_v35 }
 0x2f6   : > { %v1276_v22 = vmul.f32 %v1234_v15, %v2849_v25 }
 0x2f7   : > { %v1274_v54 = vmul.f32 %v1226_v8, %v2841_v50 }
 0x2f8   : > { %v1288_v0 = vpack.c.bf16 %v1276_v22, %v1275_v10 }
 0x2f9   : > { %v1953_v42 = vpop.f32.mrb[72].mxu1  ;;  %v1287_v62 = vpack.c.bf16 %v1274_v54, %v1273_v39 }
 0x2fa   : > { %v1247_v14 = vadd.f32 %v1953_v42, %v1171_v35  ;;  %v1238_v13 = vpop.f32.mrb[73].mxu1 }
 0x2fb   : > { %v1239_v3 = vadd.f32 %v1238_v13, %v1171_v35  ;;  %v1954_v16 = vpop.f32.mrb[74].mxu1  ;;  %1995 = vmatprep.mubr.bf16.mxu0 %v1287_v62 }
 0x2fc   : > { %v1279_v33 = vmul.f32 %v1247_v14, %v2771_v51  ;;  %v1250_v19 = vadd.f32 %v1954_v16, %v1171_v35  ;;  %v1241_v9 = vpop.f32.mrb[75].mxu1  ;;  %1996 = vmatmul.mubr.bf16.gmra.mrb[68].mxu0 %v1288_v0 }
 0x2fd   : > { %v1277_v34 = vmul.f32 %v1239_v3, %v2759_v43  ;;  %v1242_v20 = vadd.f32 %v1241_v9, %v1171_v35 }
 0x2fe   : > { %v1280_v25 = vmul.f32 %v1250_v19, %v2777_v55 }
 0x2ff   : > { %v1278_v50 = vmul.f32 %v1242_v20, %v2765_v47 }
 0x300   : > { %v1290_v63 = vpack.c.bf16 %v1280_v25, %v1279_v33 }
 0x301   : > { %v1957_v1 = vpop.f32.mrb[76].mxu1  ;;  %v1289_v28 = vpack.c.bf16 %v1278_v50, %v1277_v34 }
 0x302   : > { %v1263_v32 = vadd.f32 %v1957_v1, %v1171_v35  ;;  %v1254_v29 = vpop.f32.mrb[77].mxu1 }
 0x303   : > { %v1255_v5 = vadd.f32 %v1254_v29, %v1171_v35  ;;  %v1958_v18 = vpop.f32.mrb[78].mxu1  ;;  %1999 = vmatprep.mubr.bf16.mxu0 %v1289_v28 }
 0x304   : > { %v1283_v51 = vmul.f32 %v1263_v32, %v2795_v7  ;;  %v1266_v53 = vadd.f32 %v1958_v18, %v1171_v35  ;;  %v1257_v38 = vpop.f32.mrb[79].mxu1  ;;  %2000 = vmatmul.mubr.bf16.gmra.mrb[72].mxu0 %v1290_v63 }
 0x305   : > { %v1281_v43 = vmul.f32 %v1255_v5, %v2783_v61  ;;  %v1258_v47 = vadd.f32 %v1257_v38, %v1171_v35 }
 0x306   : > { %v1284_v55 = vmul.f32 %v1266_v53, %v2801_v12  ;;  %1293 = vst [vmem:[#allocation2 - $0x7] sm:$0x80] %v1266_v53 }
 0x307   : > { %v1282_v24 = vmul.f32 %v1258_v47, %v2789_v2 }
 0x308   : > { %v1292_v26 = vpack.c.bf16 %v1284_v55, %v1283_v51 }
 0x309   : > { %v1291_v21 = vpack.c.bf16 %v1282_v24, %v1281_v43 }
 0x30b   : > { %2003 = vmatprep.mubr.bf16.mxu0 %v1291_v21 }
 0x30c   : > { %2004 = vmatmul.mubr.bf16.gmra.mrb[76].mxu0 %v1292_v26 }
 0x39b   : > { %v1977_v7 = vpop.f32.mrb[48].mxu0 }
 0x39c   : > { %1521 = vst [vmem:[%s2713_s29 + $0x10] sm:$0xff] %v1977_v7  ;;  %v1392_v31 = vpop.f32.mrb[49].mxu0 }
 0x39d   : > { %1519 = vst [vmem:[%s2713_s29] sm:$0xff] %v1392_v31  ;;  %v1978_v61 = vpop.f32.mrb[50].mxu0 }
 0x39e   : > { %1522 = vst [vmem:[%s2713_s29 + $0x18] sm:$0xff] %v1978_v61  ;;  %v1395_v12 = vpop.f32.mrb[51].mxu0 }
 0x39f   : > { %1520 = vst [vmem:[%s2713_s29 + $0x8] sm:$0xff] %v1395_v12 }
 0x3a3   : > { %v1981_v2 = vpop.f32.mrb[52].mxu0 }
 0x3a4   : > { %1525 = vst [vmem:[%s2713_s29 + $0x30] sm:$0xff] %v1981_v2  ;;  %v1408_v45 = vpop.f32.mrb[53].mxu0 }
 0x3a5   : > { %1523 = vst [vmem:[%s2713_s29 + $0x20] sm:$0xff] %v1408_v45  ;;  %v1982_v17 = vpop.f32.mrb[54].mxu0 }
 0x3a6   : > { %1526 = vst [vmem:[%s2713_s29 + $0x38] sm:$0xff] %v1982_v17  ;;  %v1411_v35 = vpop.f32.mrb[55].mxu0 }
 0x3a7   : > { %1524 = vst [vmem:[%s2713_s29 + $0x28] sm:$0xff] %v1411_v35 }
 0x3ab   : > { %v1985_v57 = vpop.f32.mrb[56].mxu0 }
 0x3ac   : > { %1529 = vst [vmem:[%s2713_s29 + $0x50] sm:$0xff] %v1985_v57  ;;  %v1424_v23 = vpop.f32.mrb[57].mxu0 }
 0x3ad   : > { %1527 = vst [vmem:[%s2713_s29 + $0x40] sm:$0xff] %v1424_v23  ;;  %v1986_v49 = vpop.f32.mrb[58].mxu0 }
 0x3ae   : > { %1530 = vst [vmem:[%s2713_s29 + $0x58] sm:$0xff] %v1986_v49  ;;  %v1427_v27 = vpop.f32.mrb[59].mxu0 }
 0x3af   : > { %1528 = vst [vmem:[%s2713_s29 + $0x48] sm:$0xff] %v1427_v27 }
 0x3b3   : > { %v1989_v52 = vpop.f32.mrb[60].mxu0 }
 0x3b4   : > { %1533 = vst [vmem:[%s2713_s29 + $0x70] sm:$0xff] %v1989_v52  ;;  %v1440_v59 = vpop.f32.mrb[61].mxu0 }
 0x3b5   : > { %1531 = vst [vmem:[%s2713_s29 + $0x60] sm:$0xff] %v1440_v59  ;;  %v1990_v4 = vpop.f32.mrb[62].mxu0 }
 0x3b6   : > { %1534 = vst [vmem:[%s2713_s29 + $0x78] sm:$0xff] %v1990_v4  ;;  %v1443_v36 = vpop.f32.mrb[63].mxu0 }
 0x3b7   : > { %1532 = vst [vmem:[%s2713_s29 + $0x68] sm:$0xff] %v1443_v36 }
 0x3c7   : > { %v1993_v30 = vpop.f32.mrb[64].mxu0 }
 0x3c8   : > { %1537 = vst [vmem:[%s2713_s29 + $0x90] sm:$0xff] %v1993_v30  ;;  %v1456_v11 = vpop.f32.mrb[65].mxu0 }
 0x3c9   : > { %1535 = vst [vmem:[%s2713_s29 + $0x80] sm:$0xff] %v1456_v11  ;;  %v1994_v44 = vpop.f32.mrb[66].mxu0 }
 0x3ca   : > { %1538 = vst [vmem:[%s2713_s29 + $0x98] sm:$0xff] %v1994_v44  ;;  %v1459_v37 = vpop.f32.mrb[67].mxu0 }
 0x3cb   : > { %1536 = vst [vmem:[%s2713_s29 + $0x88] sm:$0xff] %v1459_v37 }
 0x3cf   : > { %v1997_v56 = vpop.f32.mrb[68].mxu0 }
 0x3d0   : > { %1541 = vst [vmem:[%s2713_s29 + $0xb0] sm:$0xff] %v1997_v56  ;;  %v1472_v48 = vpop.f32.mrb[69].mxu0 }
 0x3d1   : > { %1539 = vst [vmem:[%s2713_s29 + $0xa0] sm:$0xff] %v1472_v48  ;;  %v1998_v40 = vpop.f32.mrb[70].mxu0 }
 0x3d2   : > { %1542 = vst [vmem:[%s2713_s29 + $0xb8] sm:$0xff] %v1998_v40  ;;  %v1475_v41 = vpop.f32.mrb[71].mxu0 }
 0x3d3   : > { %1540 = vst [vmem:[%s2713_s29 + $0xa8] sm:$0xff] %v1475_v41 }
 0x3d7   : > { %v2001_v46 = vpop.f32.mrb[72].mxu0 }
 0x3d8   : > { %1545 = vst [vmem:[%s2713_s29 + $0xd0] sm:$0xff] %v2001_v46  ;;  %v1488_v58 = vpop.f32.mrb[73].mxu0 }
 0x3d9   : > { %1543 = vst [vmem:[%s2713_s29 + $0xc0] sm:$0xff] %v1488_v58  ;;  %v2002_v60 = vpop.f32.mrb[74].mxu0 }
 0x3da   : > { %1546 = vst [vmem:[%s2713_s29 + $0xd8] sm:$0xff] %v2002_v60  ;;  %v1491_v10 = vpop.f32.mrb[75].mxu0 }
 0x3db   : > { %1544 = vst [vmem:[%s2713_s29 + $0xc8] sm:$0xff] %v1491_v10 }
 0x3df   : > { %v2005_v15 = vpop.f32.mrb[76].mxu0 }
 0x3e0   : > { %1549 = vst [vmem:[%s2713_s29 + $0xf0] sm:$0xff] %v2005_v15  ;;  %v1504_v6 = vpop.f32.mrb[77].mxu0 }
 0x3e1   : > { %1547 = vst [vmem:[%s2713_s29 + $0xe0] sm:$0xff] %v1504_v6  ;;  %v2006_v39 = vpop.f32.mrb[78].mxu0 }
 0x3e2   : > { %1550 = vst [vmem:[%s2713_s29 + $0xf8] sm:$0xff] %v2006_v39  ;;  %v1507_v8 = vpop.f32.mrb[79].mxu0 }
 0x3e3   : > { %1548 = vst [vmem:[%s2713_s29 + $0xe8] sm:$0xff] %v1507_v8 }
 0x3e4   : > { %2331 = shalt.err (!%p2328_p12)
}
 0x3e5   : > { %s2332_s26 = scalar_lea.hbm %s2923_s15, 4096  ;;  %s2336_s3 = scalar_lea.hbm %s2986_s4, 16384 }
 0x3e6   : > { %p2333_p11 = scmp.ne.s32.totalorder %s2923_s15, %s2332_s26  ;;  %p2337_p9 = scmp.lt.u32.totalorder %s2923_s15, %s2986_s4 }
 0x3e7   : > { %p2338_p0 = scmp.lt.u32.totalorder %s2336_s3, %s2332_s26  ;;  %p2340_p4 = scmp.lt.u32.totalorder %s2332_s26, %s2923_s15 }
 0x3e8   : > { %p2334_p1 = pnand %p2333_p11, %p2626_p6 }
 0x3e9   : > { %p2339_p2 = por %p2338_p0, %p2337_p9 }
 0x3ea   : > { %p2335_p5 = pneg %p2334_p1 }
 0x3eb   : > { %p2341_p10 = por %p2340_p4, %p2339_p2 }
 0x3ed   : > { %p2342_p8 = pnand %p2341_p10, %p2335_p5 }
 0x3ef   : > { %2345 = shalt.err (!%p2342_p8)
}
 0x3f0   : > { %s2437_s29 = smov 128   ;;  %s2438_s25 = smov 8  }
 0x3f1   : > { %2037 = dma.vmem_to_hbm [thread:$0]  (%p2626_p6), %s2925_s9, 4096, %s2923_s15, %s1552_s23, %s2437_s29, %s2437_s29, %s2438_s25  }
 0x3f2 PF: > { %s3021_s27 = sld [smem:[#allocation16_spill]]  ;;  %s3022_s1 = sld [smem:[#allocation17_spill]] }
 0x3f3   : > { %p2064_p13 = scmp.ge.s32.totalorder %s2424_s22, 2 }
 0x3f8   : > { %s1582_s10 = sand.u32 1, %s3021_s27   ;;  %p3023_p3 = scmp.ne.s32.totalorder %s3022_s1, 0 }
 0x3f9   : > { %s1583_s18 = scalar_lea.sflag [#allocation5], %s1582_s10 }
 0x3fa   : > { %p2054_p7 = pnand %p2064_p13, %p3023_p3 }
 0x3fc   : > { %2391 = dma.done.wait (!%p2054_p7), %s1583_s18, 4096  }
 0x3fd   : > { %2393 = vsyncadd (!%p2054_p7), %s1583_s18, 4294963200  ;;  %s22_s22 = sadd.s32 1, %s2424_s22   ;;  %s3024_s12 = sld [smem:[#allocation18_spill]] }
 0x3fe   : > { %p19_p12 = scmp.ge.s32.totalorder %s22_s22, 6   ;;  %s3025_s15 = smov %s2400_s16 }
 0x3ff   : > { %s3026_s16 = smov %s2404_s17  ;;  %s3027_s17 = smov %s2643_s7 }
 0x400   : > { %s3028_s18 = smov %s2416_s20  ;;  %s3029_s19 = smov %s2420_s21 }
 0x401   : > { %s3030_s20 = smov %s3033_s6  ;;  %21 = sbr.rel (!%p19_p12) target bundleno = 13 (0xd), region = 97 }
 0x403   : > { %s3031_s21 = smov %s3024_s12 }
 0x408   :  { %1588 = vsyncpa [#allocation4], 1 }
 0x409   :  { %1590 = vsyncpa [#allocation4 + $0x1], 1 }
 0x40a   :  { %1591 = vsyncpa [#allocation7], 1 }
 0x40b   :  { %1592 = vsyncpa [#allocation10], 1 }
 0x40c   :  { %1593 = vsyncpa [#allocation5], 1 }
 0x40d   :  { %1595 = vsyncpa [#allocation5 + $0x1], 1 }

</bundles_post_ra>
